<compile_context>
chip_gen: v7x
topology: tpu7x:2x2x1
jax: 0.10.0
libtpu: 0.0.40
codegen_flags: <defaults>
</compile_context>

<pallas_src>
import functools

import jax
import jax.numpy as jnp
from jax.experimental import pallas as pl
from jax.experimental.pallas import tpu as pltpu

IN_DIM = 28 * 28          # 784
H1, H2, OUT_DIM = 300, 100, 10
# Lane-padded (multiple of 128) feature dims.
H1_PAD, H2_PAD, OUT_PAD = 384, 128, 128


def _round_up(x, m):
    return (x + m - 1) // m * m


def _cdiv(a, b):
    return -(-a // b)


def _choose_tb(b_pad128, cap):
    """Pick the batch tile: 128-multiples up to `cap`, trading padded-row waste
    (prefers tiles dividing the 128-padded batch) against per-grid-step fixed
    overhead (~0.35 us ~ a few rows of work), so big batches get big tiles."""
    best_t, best_cost = 128, None
    for t in range(128, cap + 1, 128):
        steps = _cdiv(b_pad128, t)
        cost = steps * (t + 96)   # rows incl. padding + 96-row-equivalent step cost
        if best_cost is None or cost < best_cost or (cost == best_cost and t > best_t):
            best_t, best_cost = t, cost
    return best_t


def _lenet_mlp_kernel(x_ref, w1_ref, b1_ref, w2_ref, b2_ref, w3_ref, b3_ref, o_ref):
    # Cast x to bf16 in-kernel: the input DMA stays f32, no separate XLA cast pass.
    x = x_ref[...].astype(jnp.bfloat16)
    # ip1 + bias + ReLU (f32 accumulate), stored once as bf16 for the next MXU pass.
    h1 = jnp.dot(x, w1_ref[...], preferred_element_type=jnp.float32)
    h1 = jnp.maximum(h1 + b1_ref[...], 0.0).astype(jnp.bfloat16)
    # ip2 + bias + ReLU
    h2 = jnp.dot(h1, w2_ref[...], preferred_element_type=jnp.float32)
    h2 = jnp.maximum(h2 + b2_ref[...], 0.0).astype(jnp.bfloat16)
    # ip3 (logits, no activation) — padded logit columns come out exactly 0;
    # bf16 lane-dense (128-wide) store.
    o_ref[...] = (jnp.dot(h2, w3_ref[...], preferred_element_type=jnp.float32)
                  + b3_ref[...]).astype(o_ref.dtype)


@functools.partial(jax.jit, static_argnames=("block_b",))
def lenet_300_100_forward(x, params, *, block_b=2048):
    """x: (B, 1, 28, 28) float32 (NCHW, like PyTorch).  Returns (B, 10) f32 logits.

    params: lane-padded (in, out)-layout weights/biases from init_params()[1].
    block_b: max batch tile (sweep 1024-2048; vmem_limit_bytes is derived from it).
    """
    w1, b1, w2, b2, w3, b3 = params
    B = x.shape[0]
    x2d = x.reshape(B, IN_DIM).astype(jnp.float32)  # same as torch x.view(x.size(0), 784)

    # Batch tile: multiple of 128; capped so the grid has >=2 steps whenever B allows
    # (v7x megacore), and chosen to balance padding waste vs per-step overhead.
    b_pad128 = _round_up(B, 128)
    cap = max(128, min(block_b, _round_up(_cdiv(B, 2), 128)))
    tb = _choose_tb(b_pad128, cap)
    b_pad = _round_up(B, tb)
    if b_pad != B:
        x2d = jnp.pad(x2d, ((0, b_pad - B), (0, 0)))

    # bf16 weights (native MXU dtype); biases stay f32; x stays f32 (cast in-kernel).
    w1b, w2b, w3b = (w.astype(jnp.bfloat16) for w in (w1, w2, w3))

    grid = (b_pad // tb,)

    def resident(shape):                    # weights/biases: same block every step
        return pl.BlockSpec(shape, lambda i: (0, 0))

    flops = 2 * b_pad * (IN_DIM * H1_PAD + H1_PAD * H2_PAD + H2_PAD * OUT_PAD)
    bytes_accessed = (b_pad * IN_DIM * 4                       # f32 x in
                      + (w1b.size + w2b.size + w3b.size) * 2   # bf16 weights
                      + (b1.size + b2.size + b3.size) * 4      # f32 biases
                      + b_pad * OUT_PAD * 2)                   # bf16 logits out

    # Scoped-VMEM budget for this tile size (double-buffered x/out, double-buffered
    # bf16 weights, f32+bf16 intermediates), with 2x headroom, capped for v7x.
    weight_bytes = 2 * 2 * (IN_DIM * H1_PAD + H1_PAD * H2_PAD + H2_PAD * OUT_PAD)
    scratch_bytes = tb * (H1_PAD + H2_PAD + OUT_PAD) * 6
    vmem_needed = (2 * tb * IN_DIM * 4 + 2 * tb * OUT_PAD * 2
                   + weight_bytes + scratch_bytes)
    vmem_limit = min(48 << 20, max(32 << 20, 2 * vmem_needed))

    out = pl.pallas_call(
        _lenet_mlp_kernel,
        out_shape=jax.ShapeDtypeStruct((b_pad, OUT_PAD), jnp.bfloat16),
        grid=grid,
        in_specs=[
            pl.BlockSpec((tb, IN_DIM), lambda i: (i, 0)),      # x: tiled over batch
            resident((IN_DIM, H1_PAD)), resident((1, H1_PAD)),
            resident((H1_PAD, H2_PAD)), resident((1, H2_PAD)),
            resident((H2_PAD, OUT_PAD)), resident((1, OUT_PAD)),
        ],
        out_specs=pl.BlockSpec((tb, OUT_PAD), lambda i: (i, 0)),
        compiler_params=pltpu.CompilerParams(
            dimension_semantics=("parallel",),                 # megacore-shard batch
            vmem_limit_bytes=int(vmem_limit)),
        cost_estimate=pl.CostEstimate(flops=flops, transcendentals=0,
                                      bytes_accessed=int(bytes_accessed)),
    )(x2d, w1b, b1, w2b, b2, w3b, b3)

    return out[:B, :OUT_DIM].astype(jnp.float32)


def init_params(key):
    """PyTorch-Linear-style init: U(-1/sqrt(fan_in), 1/sqrt(fan_in)).

    Returns (logical_params, padded_params); both are (in, out)-layout f32.
    padded_params have feature dims zero-padded to lane multiples for the kernel.
    """
    ks = jax.random.split(key, 6)

    def linear(kw, kb, fan_in, fan_out, fan_in_pad, fan_out_pad):
        bound = 1.0 / jnp.sqrt(jnp.float32(fan_in))
        w = jax.random.uniform(kw, (fan_in, fan_out), jnp.float32, -bound, bound)
        b = jax.random.uniform(kb, (1, fan_out), jnp.float32, -bound, bound)
        wp = jnp.zeros((fan_in_pad, fan_out_pad), jnp.float32).at[:fan_in, :fan_out].set(w)
        bp = jnp.zeros((1, fan_out_pad), jnp.float32).at[:, :fan_out].set(b)
        return (w, b), (wp, bp)

    (w1, b1), (w1p, b1p) = linear(ks[0], ks[1], IN_DIM, H1, IN_DIM, H1_PAD)
    (w2, b2), (w2p, b2p) = linear(ks[2], ks[3], H1, H2, H1_PAD, H2_PAD)
    (w3, b3), (w3p, b3p) = linear(ks[4], ks[5], H2, OUT_DIM, H2_PAD, OUT_PAD)

    logical = (w1, b1, w2, b2, w3, b3)
    padded = (w1p, b1p, w2p, b2p, w3p, b3p)
    return logical, padded


if __name__ == "__main__":
    key = jax.random.PRNGKey(0)
    k_param, k_x = jax.random.split(key)

    logical, padded = init_params(k_param)
    # Small batch, MNIST-shaped input (the forward's view() requires 28*28 features).
    x = jax.random.normal(k_x, (2, 1, 28, 28), jnp.float32)

    out = lenet_300_100_forward(x, padded)
    out = jax.block_until_ready(out)
    assert out.shape == (2, OUT_DIM)

    # Reference with the same bf16 rounding of operands (f32 accumulation) and a
    # final bf16 rounding of the logits (the kernel emits bf16 logits).
    w1, b1, w2, b2, w3, b3 = logical
    bf = lambda a: a.astype(jnp.bfloat16).astype(jnp.float32)
    x2d = x.reshape(x.shape[0], IN_DIM)
    h1 = jnp.maximum(jnp.dot(bf(x2d), bf(w1), precision="highest") + b1, 0.0)
    h2 = jnp.maximum(jnp.dot(bf(h1), bf(w2), precision="highest") + b2, 0.0)
    ref = bf(jnp.dot(bf(h2), bf(w3), precision="highest") + b3)

    err = jnp.max(jnp.abs(out - ref))
    assert jnp.allclose(out, ref, atol=5e-2, rtol=5e-2), f"max abs err {err}"

    print("KERNEL_OK")
</pallas_src>

<mosaic_0001>
module attributes {stable_mosaic.version = 11 : i64} {
  func.func @_lenet_mlp_kernel(%arg0: i32, %arg1: memref<128x784xf32, #tpu.memory_space<vmem>>, %arg2: memref<784x384xbf16, #tpu.memory_space<vmem>>, %arg3: memref<1x384xf32, #tpu.memory_space<vmem>>, %arg4: memref<384x128xbf16, #tpu.memory_space<vmem>>, %arg5: memref<1x128xf32, #tpu.memory_space<vmem>>, %arg6: memref<128x128xbf16, #tpu.memory_space<vmem>>, %arg7: memref<1x128xf32, #tpu.memory_space<vmem>>, %arg8: memref<128x128xbf16, #tpu.memory_space<vmem>>) attributes {dimension_semantics = [#tpu.dimension_semantics<parallel>], iteration_bounds = array<i64: 1>, scalar_prefetch = 0 : i64, scratch_operands = 0 : i64, tpu.core_type = #tpu.core_type<tc>, window_params = [{transform_indices = @transform_0, window_bounds = array<i64: 128, 784>}, {pipeline_mode = #tpu.pipeline_mode<synchronous>, transform_indices = @transform_1, window_bounds = array<i64: 784, 384>}, {pipeline_mode = #tpu.pipeline_mode<synchronous>, transform_indices = @transform_2, window_bounds = array<i64: 1, 384>}, {pipeline_mode = #tpu.pipeline_mode<synchronous>, transform_indices = @transform_3, window_bounds = array<i64: 384, 128>}, {pipeline_mode = #tpu.pipeline_mode<synchronous>, transform_indices = @transform_4, window_bounds = array<i64: 1, 128>}, {pipeline_mode = #tpu.pipeline_mode<synchronous>, transform_indices = @transform_5, window_bounds = array<i64: 128, 128>}, {pipeline_mode = #tpu.pipeline_mode<synchronous>, transform_indices = @transform_6, window_bounds = array<i64: 1, 128>}, {transform_indices = @transform_7, window_bounds = array<i64: 128, 128>}]} {
    %c0 = arith.constant 0 : index
    %c0_0 = arith.constant 0 : index
    %0 = vector.load %arg1[%c0, %c0_0] : memref<128x784xf32, #tpu.memory_space<vmem>>, vector<128x784xf32>
    %1 = arith.truncf %0 : vector<128x784xf32> to vector<128x784xbf16>
    %c0_1 = arith.constant 0 : index
    %c0_2 = arith.constant 0 : index
    %2 = vector.load %arg2[%c0_1, %c0_2] : memref<784x384xbf16, #tpu.memory_space<vmem>>, vector<784x384xbf16>
    %cst = arith.constant dense<0.000000e+00> : vector<128x384xf32>
    %3 = tpu.matmul %1, %2, %cst {dimension_numbers = #tpu.dot_dimension_numbers<[1], [0], [0], [1], [0, 0, 1, 1], [], []>} : vector<128x784xbf16>, vector<784x384xbf16>, vector<128x384xf32> -> vector<128x384xf32>
    %c0_3 = arith.constant 0 : index
    %c0_4 = arith.constant 0 : index
    %4 = vector.load %arg3[%c0_3, %c0_4] : memref<1x384xf32, #tpu.memory_space<vmem>>, vector<1x384xf32>
    %5 = vector.broadcast %4 : vector<1x384xf32> to vector<128x384xf32>
    %6 = arith.addf %3, %5 : vector<128x384xf32>
    %cst_5 = arith.constant 0.000000e+00 : f32
    %7 = vector.broadcast %cst_5 : f32 to vector<128x384xf32>
    %8 = arith.maximumf %6, %7 : vector<128x384xf32>
    %9 = arith.truncf %8 : vector<128x384xf32> to vector<128x384xbf16>
    %c0_6 = arith.constant 0 : index
    %c0_7 = arith.constant 0 : index
    %10 = vector.load %arg4[%c0_6, %c0_7] : memref<384x128xbf16, #tpu.memory_space<vmem>>, vector<384x128xbf16>
    %cst_8 = arith.constant dense<0.000000e+00> : vector<128x128xf32>
    %11 = tpu.matmul %9, %10, %cst_8 {dimension_numbers = #tpu.dot_dimension_numbers<[1], [0], [0], [1], [0, 0, 1, 1], [], []>} : vector<128x384xbf16>, vector<384x128xbf16>, vector<128x128xf32> -> vector<128x128xf32>
    %c0_9 = arith.constant 0 : index
    %c0_10 = arith.constant 0 : index
    %12 = vector.load %arg5[%c0_9, %c0_10] : memref<1x128xf32, #tpu.memory_space<vmem>>, vector<1x128xf32>
    %13 = vector.broadcast %12 : vector<1x128xf32> to vector<128x128xf32>
    %14 = arith.addf %11, %13 : vector<128x128xf32>
    %cst_11 = arith.constant 0.000000e+00 : f32
    %15 = vector.broadcast %cst_11 : f32 to vector<128x128xf32>
    %16 = arith.maximumf %14, %15 : vector<128x128xf32>
    %17 = arith.truncf %16 : vector<128x128xf32> to vector<128x128xbf16>
    %c0_12 = arith.constant 0 : index
    %c0_13 = arith.constant 0 : index
    %18 = vector.load %arg6[%c0_12, %c0_13] : memref<128x128xbf16, #tpu.memory_space<vmem>>, vector<128x128xbf16>
    %cst_14 = arith.constant dense<0.000000e+00> : vector<128x128xf32>
    %19 = tpu.matmul %17, %18, %cst_14 {dimension_numbers = #tpu.dot_dimension_numbers<[1], [0], [0], [1], [0, 0, 1, 1], [], []>} : vector<128x128xbf16>, vector<128x128xbf16>, vector<128x128xf32> -> vector<128x128xf32>
    %c0_15 = arith.constant 0 : index
    %c0_16 = arith.constant 0 : index
    %20 = vector.load %arg7[%c0_15, %c0_16] : memref<1x128xf32, #tpu.memory_space<vmem>>, vector<1x128xf32>
    %21 = vector.broadcast %20 : vector<1x128xf32> to vector<128x128xf32>
    %22 = arith.addf %19, %21 : vector<128x128xf32>
    %23 = arith.truncf %22 : vector<128x128xf32> to vector<128x128xbf16>
    %c0_17 = arith.constant 0 : index
    %c0_18 = arith.constant 0 : index
    %24 = vector.load %arg8[%c0_17, %c0_18] : memref<128x128xbf16, #tpu.memory_space<vmem>>, vector<128x128xbf16>
    tpu.vector_store %arg8[%c0_17, %c0_18], %23 {strides = array<i32>} : memref<128x128xbf16, #tpu.memory_space<vmem>>, vector<128x128xbf16>,
    return
  }
  func.func @transform_0(%arg0: i32) -> (i32, i32) {
    %c0_i32 = arith.constant 0 : i32
    %c0_i32_0 = arith.constant 0 : i32
    return %arg0, %c0_i32 : i32, i32
  }
  func.func @transform_1(%arg0: i32) -> (i32, i32) {
    %c0_i32 = arith.constant 0 : i32
    %c0_i32_0 = arith.constant 0 : i32
    %c0_i32_1 = arith.constant 0 : i32
    return %c0_i32, %c0_i32_0 : i32, i32
  }
  func.func @transform_2(%arg0: i32) -> (i32, i32) {
    %c0_i32 = arith.constant 0 : i32
    %c0_i32_0 = arith.constant 0 : i32
    %c0_i32_1 = arith.constant 0 : i32
    return %c0_i32, %c0_i32_0 : i32, i32
  }
  func.func @transform_3(%arg0: i32) -> (i32, i32) {
    %c0_i32 = arith.constant 0 : i32
    %c0_i32_0 = arith.constant 0 : i32
    %c0_i32_1 = arith.constant 0 : i32
    return %c0_i32, %c0_i32_0 : i32, i32
  }
  func.func @transform_4(%arg0: i32) -> (i32, i32) {
    %c0_i32 = arith.constant 0 : i32
    %c0_i32_0 = arith.constant 0 : i32
    %c0_i32_1 = arith.constant 0 : i32
    return %c0_i32, %c0_i32_0 : i32, i32
  }
  func.func @transform_5(%arg0: i32) -> (i32, i32) {
    %c0_i32 = arith.constant 0 : i32
    %c0_i32_0 = arith.constant 0 : i32
    %c0_i32_1 = arith.constant 0 : i32
    return %c0_i32, %c0_i32_0 : i32, i32
  }
  func.func @transform_6(%arg0: i32) -> (i32, i32) {
    %c0_i32 = arith.constant 0 : i32
    %c0_i32_0 = arith.constant 0 : i32
    %c0_i32_1 = arith.constant 0 : i32
    return %c0_i32, %c0_i32_0 : i32, i32
  }
  func.func @transform_7(%arg0: i32) -> (i32, i32) {
    %c0_i32 = arith.constant 0 : i32
    %c0_i32_0 = arith.constant 0 : i32
    return %arg0, %c0_i32 : i32, i32
  }
}

</mosaic_0001>

<bundles_post_ra>
// kernel: lenet_300_100_forward.1
= control target key start
LH: loop header
LB: loop body
LE: loop exit
PB: predicated region body
PF: predicated region fallthrough
CT: control target
= control target key end

     0   :  { %vm1192_vm0 = vcmask 130048   ;;  %s5158_s1 = inlined_call_operand.vmem [shape: bf16[784,384], index: 1, kind: input, shape index: {}]   ;;  %s5159_s0 = inlined_call_operand.vmem [shape: f32[128,784], index: 0, kind: input, shape index: {}]   ;;  %s5160_s3 = inlined_call_operand.vmem [shape: bf16[384,128], index: 3, kind: input, shape index: {}]   ;;  %s5161_s2 = inlined_call_operand.vmem [shape: f32[1,384], index: 2, kind: input, shape index: {}]   ;;  %s5162_s5 = inlined_call_operand.vmem [shape: bf16[128,128], index: 5, kind: input, shape index: {}]   ;;  %s5163_s4 = inlined_call_operand.vmem [shape: f32[1,128], index: 4, kind: input, shape index: {}]   ;;  %s5164_s6 = inlined_call_operand.vmem [shape: f32[1,128], index: 6, kind: input, shape index: {}]   ;;  %s5165_s7 = inlined_call_operand.vmem [shape: bf16[128,128], index: 7, kind: output, shape index: {}]  }
   0x1   :  { %v3582_v0 = vld [vmem:[%s5158_s1 + $0x4] ss:$12 sps:$4 sm:$0xff]   ;;  %v3584_v1 = vld [vmem:[%s5158_s1 + $0xc8] ss:$12 sps:$4 sm:$0xff]   ;;  %v3585_v2 = vld [vmem:[%s5158_s1] ss:$12 sps:$4 sm:$0xff]  }
   0x2   :  { %1217 = vmatprep.subr.bf16.mxu0 %v3582_v0  ;;  %3074 = vmatprep.subr.bf16.mxu1 %v3584_v1  ;;  %v3586_v3 = vld [vmem:[%s5158_s1 + $0x8] ss:$12 sps:$4 sm:$0xff]   ;;  %v3589_v5 = vld [vmem:[%s5158_s1 + $0xe0] ss:$12 sps:$4 sm:$0xff]   ;;  %v3590_v6 = vld [vmem:[%s5158_s1 + $0x18] ss:$12 sps:$4 sm:$0xff]  }
   0x3   :  { %1218 = vmatpush1.bf16.msra.mxu0 %v3585_v2  ;;  %v3587_v4 = vld [vmem:[%s5158_s1 + $0x1c] ss:$12 sps:$4 sm:$0xff]   ;;  %3075 = vmatpush3.bf16.msra.mxu1 %v3586_v3  ;;  %v3591_v7 = vld [vmem:[%s5158_s1 + $0x20] ss:$12 sps:$4 sm:$0xff]   ;;  %v3594_v9 = vld [vmem:[%s5158_s1 + $0xf8] ss:$12 sps:$4 sm:$0xff]  }
   0x4   :  { %1219 = vmatprep.subr.bf16.mxu0 %v3587_v4  ;;  %3076 = vmatprep.subr.bf16.mxu1 %v3589_v5  ;;  %v3592_v8 = vld [vmem:[%s5158_s1 + $0x34] ss:$12 sps:$4 sm:$0xff]   ;;  %v3595_v10 = vld [vmem:[%s5158_s1 + $0x30] ss:$12 sps:$4 sm:$0xff]   ;;  %v3596_v11 = vld [vmem:[%s5158_s1 + $0x38] ss:$12 sps:$4 sm:$0xff]  }
   0x5   :  { %v3597_v12 = vld [vmem:[%s5158_s1 + $0x4c] ss:$12 sps:$4 sm:$0xff]   ;;  %v3599_v13 = vld [vmem:[%s5158_s1 + $0x110] ss:$12 sps:$4 sm:$0xff]   ;;  %v3600_v14 = vld [vmem:[%s5158_s1 + $0x48] ss:$12 sps:$4 sm:$0xff]  }
   0x6   :  { %v3601_v15 = vld [vmem:[%s5158_s1 + $0x50] ss:$12 sps:$4 sm:$0xff]   ;;  %v3604_v17 = vld [vmem:[%s5158_s1 + $0x128] ss:$12 sps:$4 sm:$0xff]   ;;  %v3605_v18 = vld [vmem:[%s5158_s1 + $0x60] ss:$12 sps:$4 sm:$0xff]  }
   0x7   :  { %1220 = vmatpush1.bf16.msra.mxu0 %v3590_v6  ;;  %3077 = vmatpush3.bf16.msra.mxu1 %v3591_v7  ;;  %v3602_v16 = vld [vmem:[%s5158_s1 + $0x64] ss:$12 sps:$4 sm:$0xff]   ;;  %v3606_v19 = vld [vmem:[%s5158_s1 + $0x68] ss:$12 sps:$4 sm:$0xff]   ;;  %v3609_v21 = vld [vmem:[%s5158_s1 + $0x140] ss:$12 sps:$4 sm:$0xff]  }
   0x8   :  { %1221 = vmatprep.subr.bf16.mxu0 %v3592_v8  ;;  %3078 = vmatprep.subr.bf16.mxu1 %v3594_v9  ;;  %v3607_v20 = vld [vmem:[%s5158_s1 + $0x7c] ss:$12 sps:$4 sm:$0xff]   ;;  %v3610_v22 = vld [vmem:[%s5158_s1 + $0x78] ss:$12 sps:$4 sm:$0xff]   ;;  %v3611_v23 = vld [vmem:[%s5158_s1 + $0x80] ss:$12 sps:$4 sm:$0xff]  }
   0x9   :  { %v3612_v24 = vld [vmem:[%s5158_s1 + $0x94] ss:$12 sps:$4 sm:$0xff]   ;;  %v3614_v25 = vld [vmem:[%s5158_s1 + $0x158] ss:$12 sps:$4 sm:$0xff]   ;;  %v3615_v26 = vld [vmem:[%s5158_s1 + $0x90] ss:$12 sps:$4 sm:$0xff]  }
   0xa   :  { %v3616_v27 = vld [vmem:[%s5158_s1 + $0x98] ss:$12 sps:$4 sm:$0xff]   ;;  %v3619_v29 = vld [vmem:[%s5158_s1 + $0x170] ss:$12 sps:$4 sm:$0xff]   ;;  %v3620_v30 = vld [vmem:[%s5158_s1 + $0xa8] ss:$12 sps:$4 sm:$0xff]  }
   0xb   :  { %1222 = vmatpush1.bf16.msra.mxu0 %v3595_v10  ;;  %3079 = vmatpush3.bf16.msra.mxu1 %v3596_v11  ;;  %v3617_v28 = vld [vmem:[%s5158_s1 + $0xac] ss:$12 sps:$4 sm:$0xff]   ;;  %v35_v32 = vld [vmem:[%s5159_s0 + $0x40] sm:$0xff]  ;;  %v3621_v33 = vld [vmem:[%s5158_s1 + $0xb0] ss:$12 sps:$4 sm:$0xff]  }
   0xc   :  { %1223 = vmatprep.subr.bf16.mxu0 %v3597_v12  ;;  %3080 = vmatprep.subr.bf16.mxu1 %v3599_v13  ;;  %v28_v31 = vld [vmem:[%s5159_s0 + $0x8] sm:$0xff]  ;;  %v3622_v35 = vld [vmem:[%s5158_s1 + $0xc4] ss:$12 sps:$4 sm:$0xff]   ;;  %v34_v37 = vld [vmem:[%s5159_s0 + $0x38] sm:$0xff] }
   0xd   :  { %v140_v34 = vpack.c.bf16 %v35_v32, %v28_v31  ;;  %v27_v36 = vld [vmem:[%s5159_s0] sm:$0xff]  ;;  %v42_v38 = vld [vmem:[%s5159_s0 + $0x78] sm:$0xff]  ;;  %v49_v39 = vld [vmem:[%s5159_s0 + $0xb0] sm:$0xff] }
   0xe   :  { %v3968_v40 = vpack.c.bf16 %v34_v37, %v27_v36  ;;  %v3624_v41 = vld [vmem:[%s5158_s1 + $0xc0] ss:$12 sps:$4 sm:$0xff]   ;;  %v3625_v42 = vld [vmem:[%s5158_s1 + $0xdc] ss:$12 sps:$4 sm:$0xff]   ;;  %v3976_v43 = vpack.c.bf16 %v49_v39, %v42_v38  ;;  %v3627_v44 = vld [vmem:[%s5158_s1 + $0xd8] ss:$12 sps:$4 sm:$0xff]  }
   0xf   :  { %1224 = vmatpush1.bf16.msra.mxu0 %v3600_v14  ;;  %3081 = vmatpush3.bf16.msra.mxu1 %v3601_v15  ;;  %v3628_v45 = vld [vmem:[%s5158_s1 + $0xf4] ss:$12 sps:$4 sm:$0xff]   ;;  %v48_v47 = vld [vmem:[%s5159_s0 + $0xa8] sm:$0xff]  ;;  %v3630_v51 = vld [vmem:[%s5158_s1 + $0xf0] ss:$12 sps:$4 sm:$0xff]  }
  0x10   :  { %1225 = vmatprep.subr.bf16.mxu0 %v3602_v16  ;;  %3082 = vmatprep.subr.bf16.mxu1 %v3604_v17  ;;  %v41_v46 = vld [vmem:[%s5159_s0 + $0x70] sm:$0xff]  ;;  %v56_v48 = vld [vmem:[%s5159_s0 + $0xe8] sm:$0xff]  ;;  %v63_v49 = vld [vmem:[%s5159_s0 + $0x120] sm:$0xff] }
  0x11   :  { %1701 = vmatprep.mubr.bf16.mxu1 %v140_v34  ;;  %1249 = vmatprep.mubr.bf16.mxu0 %v140_v34  ;;  %v3998_v50 = vpack.c.bf16 %v48_v47, %v41_v46  ;;  %v3631_v52 = vld [vmem:[%s5158_s1 + $0x10c] ss:$12 sps:$4 sm:$0xff]   ;;  %v4006_v53 = vpack.c.bf16 %v63_v49, %v56_v48  ;;  %v3633_v54 = vld [vmem:[%s5158_s1 + $0x108] ss:$12 sps:$4 sm:$0xff]   ;;  %v3634_v55 = vld [vmem:[%s5158_s1 + $0x124] ss:$12 sps:$4 sm:$0xff]  }
  0x12   :  { %v55_v56 = vld [vmem:[%s5159_s0 + $0xe0] sm:$0xff]  ;;  %v62_v57 = vld [vmem:[%s5159_s0 + $0x118] sm:$0xff]  ;;  %v77_v59 = vld [vmem:[%s5159_s0 + $0x190] sm:$0xff] }
  0x13   :  { %1226 = vmatpush1.bf16.msra.mxu0 %v3605_v18  ;;  %3083 = vmatpush3.bf16.msra.mxu1 %v3606_v19  ;;  %v70_v58 = vld [vmem:[%s5159_s0 + $0x158] sm:$0xff]  ;;  %v3649_v60 = vld [vmem:[%s5158_s1 + $0x248] ss:$12 sps:$4 sm:$0xff]   ;;  %v4034_v62 = vpack.c.bf16 %v62_v57, %v55_v56  ;;  %v3636_v63 = vld [vmem:[%s5158_s1 + $0x120] ss:$12 sps:$4 sm:$0xff]  }
  0x14   :  { %1227 = vmatprep.subr.bf16.mxu0 %v3607_v20  ;;  %3084 = vmatprep.subr.bf16.mxu1 %v3609_v21  ;;  %v3650_v61 = vld [vmem:[%s5158_s1 + $0x188] ss:$12 sps:$4 sm:$0xff]   ;;  %v4042_v1 = vpack.c.bf16 %v77_v59, %v70_v58  ;;  %v3654_v2 = vld [vmem:[%s5158_s1 + $0x260] ss:$12 sps:$4 sm:$0xff]   ;;  %v3639_v3 = vld [vmem:[%s5158_s1 + $0x138] ss:$12 sps:$4 sm:$0xff]  }
  0x15   :  { %v3637_v0 = vld [vmem:[%s5158_s1 + $0x13c] ss:$12 sps:$4 sm:$0xff]   ;;  %v3655_v4 = vld [vmem:[%s5158_s1 + $0x1a0] ss:$12 sps:$4 sm:$0xff]   ;;  %v69_v6 = vld [vmem:[%s5159_s0 + $0x150] sm:$0xff] }
  0x16   :  { %v3640_v5 = vld [vmem:[%s5158_s1 + $0x154] ss:$12 sps:$4 sm:$0xff]   ;;  %v76_v7 = vld [vmem:[%s5159_s0 + $0x188] sm:$0xff]  ;;  %v3659_v10 = vld [vmem:[%s5158_s1 + $0x278] ss:$12 sps:$4 sm:$0xff]  }
  0x17   :  { %1228 = vmatpush1.bf16.msra.mxu0 %v3610_v22  ;;  %3085 = vmatpush3.bf16.msra.mxu1 %v3611_v23  ;;  %v84_v8 = vld [vmem:[%s5159_s0 + $0x1c8] sm:$0xff]  ;;  %v91_v9 = vld [vmem:[%s5159_s0 + $0x200] sm:$0xff]  ;;  %v4076_v12 = vpack.c.bf16 %v76_v7, %v69_v6  ;;  %v3642_v13 = vld [vmem:[%s5158_s1 + $0x150] ss:$12 sps:$4 sm:$0xff]  }
  0x18   :  { %1229 = vmatprep.subr.bf16.mxu0 %v3612_v24  ;;  %3086 = vmatprep.subr.bf16.mxu1 %v3614_v25  ;;  %v3660_v11 = vld [vmem:[%s5158_s1 + $0x1b8] ss:$12 sps:$4 sm:$0xff]   ;;  %v4084_v15 = vpack.c.bf16 %v91_v9, %v84_v8  ;;  %v3664_v16 = vld [vmem:[%s5158_s1 + $0x290] ss:$12 sps:$4 sm:$0xff]   ;;  %v3645_v18 = vld [vmem:[%s5158_s1 + $0x168] ss:$12 sps:$4 sm:$0xff]  }
  0x19   :  { %v3643_v14 = vld [vmem:[%s5158_s1 + $0x16c] ss:$12 sps:$4 sm:$0xff]   ;;  %v3665_v17 = vld [vmem:[%s5158_s1 + $0x1d0] ss:$12 sps:$4 sm:$0xff]   ;;  %v83_v20 = vld [vmem:[%s5159_s0 + $0x1c0] sm:$0xff] }
  0x1a   :  { %v3648_v19 = vld [vmem:[%s5158_s1 + $0x184] ss:$12 sps:$4 sm:$0xff]   ;;  %v90_v21 = vld [vmem:[%s5159_s0 + $0x1f8] sm:$0xff]  ;;  %v3669_v24 = vld [vmem:[%s5158_s1 + $0x2a8] ss:$12 sps:$4 sm:$0xff]  }
  0x1b   :  { %1230 = vmatpush1.bf16.msra.mxu0 %v3615_v26  ;;  %3087 = vmatpush3.bf16.msra.mxu1 %v3616_v27  ;;  %v98_v22 = vld [vmem:[%s5159_s0 + $0x238] sm:$0xff]  ;;  %v105_v23 = vld [vmem:[%s5159_s0 + $0x270] sm:$0xff]  ;;  %v3646_v26 = vld [vmem:[%s5158_s1 + $0x180] ss:$12 sps:$4 sm:$0xff]   ;;  %v4121_v27 = vpack.c.bf16 %v90_v21, %v83_v20 }
  0x1c   :  { %1231 = vmatprep.subr.bf16.mxu0 %v3617_v28  ;;  %3088 = vmatprep.subr.bf16.mxu1 %v3619_v29  ;;  %v3670_v25 = vld [vmem:[%s5158_s1 + $0x1e8] ss:$12 sps:$4 sm:$0xff]   ;;  %v3674_v29 = vld [vmem:[%s5158_s1 + $0x2c0] ss:$12 sps:$4 sm:$0xff]   ;;  %v3651_v32 = vld [vmem:[%s5158_s1 + $0x198] ss:$12 sps:$4 sm:$0xff]  }
  0x1d   :  { %v3653_v28 = vld [vmem:[%s5158_s1 + $0x19c] ss:$12 sps:$4 sm:$0xff]   ;;  %v3675_v31 = vld [vmem:[%s5158_s1 + $0x200] ss:$12 sps:$4 sm:$0xff]   ;;  %v97_v34 = vld [vmem:[%s5159_s0 + $0x230] sm:$0xff] }
  0x1e   :  { %v112_v36 = vld [vmem:[%s5159_s0 + $0x2a8] sm:$0xff]  ;;  %v119_v37 = vld [vmem:[%s5159_s0 + $0x2e0] sm:$0xff]  ;;  %v118_v49 = vld [vmem:[%s5159_s0 + $0x2d8] sm:$0xff] }
  0x1f   :  { %1232 = vmatpush1.bf16.msra.mxu0 %v3620_v30  ;;  %3089 = vmatpush3.bf16.msra.mxu1 %v3621_v33  ;;  %v4129_v30 = vpack.c.bf16 %v105_v23, %v98_v22  ;;  %v3658_v33 = vld [vmem:[%s5158_s1 + $0x1b4] ss:$12 sps:$4 sm:$0xff]   ;;  %v3679_v38 = vld [vmem:[%s5158_s1 + $0x2d8] ss:$12 sps:$4 sm:$0xff]   ;;  %v132_v59 = vld [vmem:[%s5159_s0 + $0x348] sm:$0xff] }
  0x20   :  { %1233 = vmatprep.subr.bf16.mxu0 %v3622_v35  ;;  %3138 = vmatprep.subr.bf16.mxu1 %v3649_v60  ;;  %v104_v35 = vld [vmem:[%s5159_s0 + $0x268] sm:$0xff]  ;;  %v3680_v39 = vld [vmem:[%s5158_s1 + $0x218] ss:$12 sps:$4 sm:$0xff]   ;;  %v3678_v57 = vld [vmem:[%s5158_s1 + $0x214] ss:$12 sps:$4 sm:$0xff]  }
  0x21   :  { %v3661_v46 = vld [vmem:[%s5158_s1 + $0x1c8] ss:$12 sps:$4 sm:$0xff]   ;;  %v3668_v47 = vld [vmem:[%s5158_s1 + $0x1e4] ss:$12 sps:$4 sm:$0xff]   ;;  %v30_v60 = vld [vmem:[%s5159_s0 + $0x18] sm:$0xff] }
  0x22   :  { %1702 = vmatmul.mubr.bf16.vlgmr.msra.gmra.mrb[0].mxu1 %v3968_v40  ;;  %v111_v48 = vld [vmem:[%s5159_s0 + $0x2a0] sm:$0xff]  ;;  %v125_v58 = vld [vmem:[%s5159_s0 + $0x310] sm:$0xff]  ;;  %v44_v6 = vld [vmem:[%s5159_s0 + $0x88] sm:$0xff] }
  0x23   :  { %1234 = vmatpush1.bf16.msra.mxu0 %v3624_v41  ;;  %1709 = vmatprep.mubr.bf16.mxu1 %v3976_v43  ;;  %v4165_v41 = vpack.c.bf16 %v104_v35, %v97_v34  ;;  %v3671_v56 = vld [vmem:[%s5158_s1 + $0x1f8] ss:$12 sps:$4 sm:$0xff]   ;;  %v3713_v7 = vld [vmem:[%s5158_s1 + $0x3c8] ss:$12 sps:$4 sm:$0xff]   ;;  %v3686_v9 = vld [vmem:[%s5158_s1 + $0x240] ss:$12 sps:$4 sm:$0xff]  }
  0x24   :  { %1235 = vmatprep.subr.bf16.mxu0 %v3625_v42  ;;  %3139 = vmatpush3.bf16.msra.mxu1 %v3650_v61  ;;  %v3663_v42 = vld [vmem:[%s5158_s1 + $0x1cc] ss:$12 sps:$4 sm:$0xff]   ;;  %v37_v61 = vld [vmem:[%s5159_s0 + $0x50] sm:$0xff]  ;;  %v51_v8 = vld [vmem:[%s5159_s0 + $0xc0] sm:$0xff] }
  0x25   :  { %3140 = vmatprep.subr.bf16.mxu1 %v3654_v2  ;;  %v3681_v2 = vld [vmem:[%s5158_s1 + $0x228] ss:$12 sps:$4 sm:$0xff]   ;;  %v3719_v21 = vld [vmem:[%s5158_s1 + $0x320] ss:$12 sps:$4 sm:$0xff]   ;;  %v3723_v22 = vld [vmem:[%s5158_s1 + $0x3f8] ss:$12 sps:$4 sm:$0xff]  }
  0x26   :  { %v65_v20 = vld [vmem:[%s5159_s0 + $0x130] sm:$0xff]  ;;  %v79_v34 = vld [vmem:[%s5159_s0 + $0x1a0] sm:$0xff] }
  0x27   :  { %1236 = vmatpush1.bf16.msra.mxu0 %v3627_v44  ;;  %v4173_v44 = vpack.c.bf16 %v119_v37, %v112_v36  ;;  %v3692_v23 = vld [vmem:[%s5158_s1 + $0x270] ss:$12 sps:$4 sm:$0xff]   ;;  %v3733_v36 = vld [vmem:[%s5158_s1 + $0x428] ss:$12 sps:$4 sm:$0xff]   ;;  %v3698_v37 = vld [vmem:[%s5158_s1 + $0x2a0] ss:$12 sps:$4 sm:$0xff]  }
  0x28   :  { %1237 = vmatprep.subr.bf16.mxu0 %v3628_v45  ;;  %3141 = vmatpush3.bf16.msra.mxu1 %v3655_v4  ;;  %v3685_v45 = vld [vmem:[%s5158_s1 + $0x230] ss:$12 sps:$4 sm:$0xff]  }
  0x29   :  { %3142 = vmatprep.subr.bf16.mxu1 %v3659_v10  ;;  %v29_v4 = vld [vmem:[%s5159_s0 + $0x10] sm:$0xff] }
  0x2a   :  { %1710 = vmatmul.mubr.bf16.gmra.mrb[4].mxu1 %v3998_v50  ;;  %v3729_v35 = vld [vmem:[%s5158_s1 + $0x350] ss:$12 sps:$4 sm:$0xff]  }
  0x2b   :  { %1238 = vmatpush1.bf16.msra.mxu0 %v3630_v51  ;;  %1717 = vmatprep.mubr.bf16.mxu1 %v4006_v53  ;;  %v133_v51 = vld [vmem:[%s5159_s0 + $0x350] sm:$0xff] }
  0x2c   :  { %1239 = vmatprep.subr.bf16.mxu0 %v3631_v52  ;;  %3143 = vmatpush3.bf16.msra.mxu1 %v3660_v11  ;;  %v3666_v52 = vld [vmem:[%s5158_s1 + $0x1e0] ss:$12 sps:$4 sm:$0xff]   ;;  %v3691_v11 = vld [vmem:[%s5158_s1 + $0x25c] ss:$12 sps:$4 sm:$0xff]  }
  0x2d   :  { %3144 = vmatprep.subr.bf16.mxu1 %v3664_v16  ;;  %v3694_v16 = vld [vmem:[%s5158_s1 + $0x274] ss:$12 sps:$4 sm:$0xff]  }
  0x2f   :  { %1240 = vmatpush1.bf16.msra.mxu0 %v3633_v54  ;;  %v3673_v54 = vld [vmem:[%s5158_s1 + $0x1fc] ss:$12 sps:$4 sm:$0xff]  }
  0x30   :  { %1241 = vmatprep.subr.bf16.mxu0 %v3634_v55  ;;  %3145 = vmatpush3.bf16.msra.mxu1 %v3665_v17  ;;  %v43_v17 = vld [vmem:[%s5159_s0 + $0x80] sm:$0xff] }
  0x31   :  { %3146 = vmatprep.subr.bf16.mxu1 %v3669_v24 }
  0x32   :  { %1718 = vmatmul.mubr.bf16.gmra.mrb[8].mxu1 %v4034_v62 }
  0x33   :  { %1242 = vmatpush1.bf16.msra.mxu0 %v3636_v63  ;;  %1725 = vmatprep.mubr.bf16.mxu1 %v4042_v1  ;;  %v4235_v63 = vpack.c.bf16 %v132_v59, %v125_v58  ;;  %v3712_v58 = vld [vmem:[%s5158_s1 + $0x304] ss:$12 sps:$4 sm:$0xff]  }
  0x34   :  { %1243 = vmatprep.subr.bf16.mxu0 %v3637_v0  ;;  %3147 = vmatpush3.bf16.msra.mxu1 %v3670_v25  ;;  %v3683_v0 = vld [vmem:[%s5158_s1 + $0x22c] ss:$12 sps:$4 sm:$0xff]   ;;  %v85_v59 = vld [vmem:[%s5159_s0 + $0x1d0] sm:$0xff] }
  0x35   :  { %3148 = vmatprep.subr.bf16.mxu1 %v3674_v29  ;;  %v3697_v25 = vld [vmem:[%s5158_s1 + $0x28c] ss:$12 sps:$4 sm:$0xff]   ;;  %v3728_v29 = vld [vmem:[%s5158_s1 + $0x410] ss:$12 sps:$4 sm:$0xff]  }
  0x37   :  { %1244 = vmatpush1.bf16.msra.mxu0 %v3639_v3  ;;  %v3688_v3 = vld [vmem:[%s5158_s1 + $0x244] ss:$12 sps:$4 sm:$0xff]  }
  0x38   :  { %1245 = vmatprep.subr.bf16.mxu0 %v3640_v5  ;;  %3149 = vmatpush3.bf16.msra.mxu1 %v3675_v31  ;;  %v36_v5 = vld [vmem:[%s5159_s0 + $0x48] sm:$0xff]  ;;  %v57_v31 = vld [vmem:[%s5159_s0 + $0xf0] sm:$0xff] }
  0x39   :  { %3150 = vmatprep.subr.bf16.mxu1 %v3679_v38  ;;  %v4270_v10 = vpack.c.bf16 %v36_v5, %v29_v4  ;;  %v3715_v4 = vld [vmem:[%s5158_s1 + $0x318] ss:$12 sps:$4 sm:$0xff]   ;;  %v3722_v5 = vld [vmem:[%s5158_s1 + $0x334] ss:$12 sps:$4 sm:$0xff]  }
  0x3a   :  { %1726 = vmatmul.mubr.bf16.gmra.mrb[12].mxu1 %v4076_v12 }
  0x3b   :  { %1246 = vmatpush1.bf16.msra.mxu0 %v3642_v13  ;;  %1733 = vmatprep.mubr.bf16.mxu1 %v4084_v15  ;;  %v4278_v13 = vpack.c.bf16 %v51_v8, %v44_v6  ;;  %v99_v6 = vld [vmem:[%s5159_s0 + $0x240] sm:$0xff]  ;;  %v114_v8 = vld [vmem:[%s5159_s0 + $0x2b8] sm:$0xff] }
  0x3c   :  { %1247 = vmatprep.subr.bf16.mxu0 %v3643_v14  ;;  %3151 = vmatpush3.bf16.msra.mxu1 %v3680_v39  ;;  %v3714_v14 = vld [vmem:[%s5158_s1 + $0x308] ss:$12 sps:$4 sm:$0xff]  }
  0x3d   :  { %v3703_v39 = vld [vmem:[%s5158_s1 + $0x2bc] ss:$12 sps:$4 sm:$0xff]  }
  0x3f   :  { %1248 = vmatpush1.bf16.msra.mxu0 %v3645_v18  ;;  %v50_v18 = vld [vmem:[%s5159_s0 + $0xb8] sm:$0xff] }
  0x40   :  { %1330 = vmatprep.subr.bf16.mxu0 %v3648_v19  ;;  %v58_v19 = vld [vmem:[%s5159_s0 + $0xf8] sm:$0xff]  ;;  %v4314_v24 = vpack.c.bf16 %v50_v18, %v43_v17  ;;  %v120_v17 = vld [vmem:[%s5159_s0 + $0x2e8] sm:$0xff] }
  0x41   :  { %v128_v18 = vld [vmem:[%s5159_s0 + $0x328] sm:$0xff] }
  0x42   :  { %1250 = vmatmul.mubr.bf16.vlgmr.msra.gmra.mrb[0].mxu0 %v3968_v40  ;;  %1734 = vmatmul.mubr.bf16.gmra.mrb[16].mxu1 %v4121_v27  ;;  %v3656_v40 = vld [vmem:[%s5158_s1 + $0x1b0] ss:$12 sps:$4 sm:$0xff]  }
  0x43   :  { %1331 = vmatpush1.bf16.msra.mxu0 %v3646_v26  ;;  %1259 = vmatprep.mubr.bf16.mxu0 %v3976_v43  ;;  %v3684_v43 = vld [vmem:[%s5158_s1 + $0x2f0] ss:$12 sps:$4 sm:$0xff]   ;;  %v3695_v26 = vld [vmem:[%s5158_s1 + $0x288] ss:$12 sps:$4 sm:$0xff]  }
  0x44   :  { %1332 = vmatprep.subr.bf16.mxu0 %v3653_v28  ;;  %1741 = vmatprep.mubr.bf16.mxu1 %v4129_v30  ;;  %v3724_v28 = vld [vmem:[%s5158_s1 + $0x338] ss:$12 sps:$4 sm:$0xff]  }
  0x45   :  { %3152 = vmatprep.subr.bf16.mxu1 %v3684_v43  ;;  %v3738_v43 = vld [vmem:[%s5158_s1 + $0x440] ss:$12 sps:$4 sm:$0xff]  }
  0x46   :  { %3153 = vmatpush3.bf16.msra.mxu1 %v3685_v45  ;;  %v71_v45 = vld [vmem:[%s5159_s0 + $0x160] sm:$0xff] }
  0x47   :  { %1333 = vmatpush1.bf16.msra.mxu0 %v3651_v32  ;;  %3202 = vmatprep.subr.bf16.mxu1 %v3713_v7  ;;  %v64_v32 = vld [vmem:[%s5159_s0 + $0x128] sm:$0xff]  ;;  %v106_v7 = vld [vmem:[%s5159_s0 + $0x278] sm:$0xff] }
  0x48   :  { %1334 = vmatprep.subr.bf16.mxu0 %v3658_v33  ;;  %v72_v33 = vld [vmem:[%s5159_s0 + $0x168] sm:$0xff]  ;;  %v4358_v38 = vpack.c.bf16 %v64_v32, %v57_v31  ;;  %v3740_v31 = vld [vmem:[%s5158_s1 + $0x390] ss:$12 sps:$4 sm:$0xff]  }
  0x4a   :  { %1260 = vmatmul.mubr.bf16.gmra.mrb[4].mxu0 %v3998_v50  ;;  %1742 = vmatmul.mubr.bf16.gmra.mrb[20].mxu1 %v4165_v41  ;;  %v126_v50 = vld [vmem:[%s5159_s0 + $0x318] sm:$0xff] }
  0x4b   :  { %1335 = vmatpush1.bf16.msra.mxu0 %v3656_v40  ;;  %1269 = vmatprep.mubr.bf16.mxu0 %v4006_v53  ;;  %v4203_v53 = vpack.c.bf16 %v118_v49, %v111_v48  ;;  %v4208_v55 = vpack.c.bf16 %v133_v51, %v126_v50  ;;  %v3701_v40 = vld [vmem:[%s5158_s1 + $0x2b8] ss:$12 sps:$4 sm:$0xff]   ;;  %v93_v48 = vld [vmem:[%s5159_s0 + $0x210] sm:$0xff]  ;;  %v3739_v49 = vld [vmem:[%s5158_s1 + $0x380] ss:$12 sps:$4 sm:$0xff]  }
  0x4c   :  { %1336 = vmatprep.subr.bf16.mxu0 %v3663_v42  ;;  %1749 = vmatprep.mubr.bf16.mxu1 %v4173_v44  ;;  %v3734_v42 = vld [vmem:[%s5158_s1 + $0x368] ss:$12 sps:$4 sm:$0xff]   ;;  %v3743_v50 = vld [vmem:[%s5158_s1 + $0x458] ss:$12 sps:$4 sm:$0xff]   ;;  %v3704_v51 = vld [vmem:[%s5158_s1 + $0x2d0] ss:$12 sps:$4 sm:$0xff]  }
  0x4f   :  { %1337 = vmatpush1.bf16.msra.mxu0 %v3661_v46  ;;  %v78_v46 = vld [vmem:[%s5159_s0 + $0x198] sm:$0xff] }
  0x50   :  { %1338 = vmatprep.subr.bf16.mxu0 %v3668_v47  ;;  %v86_v47 = vld [vmem:[%s5159_s0 + $0x1d8] sm:$0xff] }
  0x52   :  { %1270 = vmatmul.mubr.bf16.gmra.mrb[8].mxu0 %v4034_v62  ;;  %1750 = vmatmul.mubr.bf16.gmra.mrb[24].mxu1 %v4203_v53  ;;  %v3676_v62 = vld [vmem:[%s5158_s1 + $0x210] ss:$12 sps:$4 sm:$0xff]  }
  0x53   :  { %1339 = vmatpush1.bf16.msra.mxu0 %v3666_v52  ;;  %1279 = vmatprep.mubr.bf16.mxu0 %v4042_v1  ;;  %v4240_v1 = vpack.c.bf16 %v37_v61, %v30_v60  ;;  %v4402_v52 = vpack.c.bf16 %v78_v46, %v71_v45  ;;  %v92_v60 = vld [vmem:[%s5159_s0 + $0x208] sm:$0xff]  ;;  %v3753_v45 = vld [vmem:[%s5158_s1 + $0x3d8] ss:$12 sps:$4 sm:$0xff]   ;;  %v3758_v46 = vld [vmem:[%s5158_s1 + $0x3f4] ss:$12 sps:$4 sm:$0xff]  }
  0x54   :  { %1340 = vmatprep.subr.bf16.mxu0 %v3673_v54  ;;  %1757 = vmatprep.mubr.bf16.mxu1 %v4208_v55  ;;  %v4407_v54 = vpack.c.bf16 %v93_v48, %v86_v47  ;;  %v100_v61 = vld [vmem:[%s5159_s0 + $0x248] sm:$0xff]  ;;  %v45_v47 = vld [vmem:[%s5159_s0 + $0x90] sm:$0xff] }
  0x55   :  { %v52_v48 = vld [vmem:[%s5159_s0 + $0xc8] sm:$0xff] }
  0x57   :  { %1341 = vmatpush1.bf16.msra.mxu0 %v3671_v56  ;;  %v3748_v56 = vld [vmem:[%s5158_s1 + $0x470] ss:$12 sps:$4 sm:$0xff]  }
  0x58   :  { %1342 = vmatprep.subr.bf16.mxu0 %v3678_v57  ;;  %v3707_v57 = vld [vmem:[%s5158_s1 + $0x2e8] ss:$12 sps:$4 sm:$0xff]  }
  0x5a   :  { %1280 = vmatmul.mubr.bf16.gmra.mrb[12].mxu0 %v4076_v12  ;;  %1758 = vmatmul.mubr.bf16.gmra.mrb[28].mxu1 %v4235_v63  ;;  %v3689_v12 = vld [vmem:[%s5158_s1 + $0x258] ss:$12 sps:$4 sm:$0xff]  }
  0x5b   :  { %1343 = vmatpush1.bf16.msra.mxu0 %v3676_v62  ;;  %1289 = vmatprep.mubr.bf16.mxu0 %v4084_v15  ;;  %v3718_v15 = vld [vmem:[%s5158_s1 + $0x3e0] ss:$12 sps:$4 sm:$0xff]   ;;  %v3749_v62 = vld [vmem:[%s5158_s1 + $0x3b0] ss:$12 sps:$4 sm:$0xff]  }
  0x5c   :  { %1344 = vmatprep.subr.bf16.mxu0 %v3683_v0  ;;  %1798 = vmatprep.mubr.bf16.mxu1 %v4240_v1  ;;  %v3710_v0 = vld [vmem:[%s5158_s1 + $0x300] ss:$12 sps:$4 sm:$0xff]  }
  0x5f   :  { %1345 = vmatpush1.bf16.msra.mxu0 %v3681_v2  ;;  %v3717_v2 = vld [vmem:[%s5158_s1 + $0x31c] ss:$12 sps:$4 sm:$0xff]  }
  0x60   :  { %1346 = vmatprep.subr.bf16.mxu0 %v3688_v3 }
  0x62   :  { %1290 = vmatmul.mubr.bf16.gmra.mrb[16].mxu0 %v4121_v27  ;;  %1799 = vmatmul.mubr.bf16.vlgmr.msra.gmra.mrb[32].mxu1 %v4270_v10  ;;  %v4322_v27 = vpack.c.bf16 %v65_v20, %v58_v19  ;;  %v135_v19 = vld [vmem:[%s5159_s0 + $0x360] sm:$0xff] }
  0x63   :  { %1347 = vmatpush1.bf16.msra.mxu0 %v3686_v9  ;;  %1299 = vmatprep.mubr.bf16.mxu0 %v4129_v30  ;;  %v3700_v30 = vld [vmem:[%s5158_s1 + $0x2a4] ss:$12 sps:$4 sm:$0xff]   ;;  %v3730_v20 = vld [vmem:[%s5158_s1 + $0x360] ss:$12 sps:$4 sm:$0xff]  }
  0x64   :  { %1348 = vmatprep.subr.bf16.mxu0 %v3691_v11  ;;  %1806 = vmatprep.mubr.bf16.mxu1 %v4278_v13  ;;  %v121_v9 = vld [vmem:[%s5159_s0 + $0x2f0] sm:$0xff]  ;;  %v4475_v11 = vpack.c.bf16 %v106_v7, %v99_v6  ;;  %v95_v6 = vld [vmem:[%s5159_s0 + $0x220] sm:$0xff] }
  0x65   :  { %3203 = vmatpush3.bf16.msra.mxu1 %v3714_v14  ;;  %v3725_v14 = vld [vmem:[%s5158_s1 + $0x348] ss:$12 sps:$4 sm:$0xff]   ;;  %v3768_v7 = vld [vmem:[%s5158_s1 + $0x450] ss:$12 sps:$4 sm:$0xff]  }
  0x66   :  { %3204 = vmatprep.subr.bf16.mxu1 %v3718_v15  ;;  %v3732_v15 = vld [vmem:[%s5158_s1 + $0x364] ss:$12 sps:$4 sm:$0xff]  }
  0x67   :  { %1349 = vmatpush1.bf16.msra.mxu0 %v3689_v12  ;;  %v3727_v12 = vld [vmem:[%s5158_s1 + $0x34c] ss:$12 sps:$4 sm:$0xff]  }
  0x68   :  { %1350 = vmatprep.subr.bf16.mxu0 %v3694_v16  ;;  %v113_v16 = vld [vmem:[%s5159_s0 + $0x2b0] sm:$0xff] }
  0x69   :  { %3205 = vmatpush3.bf16.msra.mxu1 %v3719_v21  ;;  %v4507_v21 = vpack.c.bf16 %v120_v17, %v113_v16  ;;  %v109_v16 = vld [vmem:[%s5159_s0 + $0x290] sm:$0xff]  ;;  %v3774_v17 = vld [vmem:[%s5158_s1 + $0x480] ss:$12 sps:$4 sm:$0xff]  }
  0x6a   :  { %1300 = vmatmul.mubr.bf16.gmra.mrb[20].mxu0 %v4165_v41  ;;  %3206 = vmatprep.subr.bf16.mxu1 %v3723_v22  ;;  %v4366_v41 = vpack.c.bf16 %v79_v34, %v72_v33  ;;  %v3737_v22 = vld [vmem:[%s5158_s1 + $0x37c] ss:$12 sps:$4 sm:$0xff]   ;;  %v3747_v33 = vld [vmem:[%s5158_s1 + $0x3ac] ss:$12 sps:$4 sm:$0xff]  }
  0x6b   :  { %1807 = vmatmul.mubr.bf16.gmra.mrb[36].mxu1 %v4314_v24  ;;  %1351 = vmatpush1.bf16.msra.mxu0 %v3692_v23  ;;  %v4512_v23 = vpack.c.bf16 %v135_v19, %v128_v18 }
  0x6c   :  { %1352 = vmatprep.subr.bf16.mxu0 %v3697_v25  ;;  %1309 = vmatprep.mubr.bf16.mxu0 %v4173_v44  ;;  %v3706_v44 = vld [vmem:[%s5158_s1 + $0x2d4] ss:$12 sps:$4 sm:$0xff]   ;;  %v3735_v25 = vld [vmem:[%s5158_s1 + $0x378] ss:$12 sps:$4 sm:$0xff]  }
  0x6d   :  { %1814 = vmatprep.mubr.bf16.mxu1 %v4322_v27  ;;  %3207 = vmatpush3.bf16.msra.mxu1 %v3724_v28  ;;  %v134_v28 = vld [vmem:[%s5159_s0 + $0x358] sm:$0xff] }
  0x6e   :  { %3208 = vmatprep.subr.bf16.mxu1 %v3728_v29  ;;  %v32_v29 = vld [vmem:[%s5159_s0 + $0x28] sm:$0xff] }
  0x6f   :  { %1353 = vmatpush1.bf16.msra.mxu0 %v3695_v26  ;;  %v3742_v26 = vld [vmem:[%s5158_s1 + $0x394] ss:$12 sps:$4 sm:$0xff]  }
  0x70   :  { %1354 = vmatprep.subr.bf16.mxu0 %v3700_v30  ;;  %v39_v30 = vld [vmem:[%s5159_s0 + $0x60] sm:$0xff] }
  0x71   :  { %3209 = vmatpush3.bf16.msra.mxu1 %v3729_v35  ;;  %v4547_v34 = vpack.c.bf16 %v39_v30, %v32_v29  ;;  %v3745_v35 = vld [vmem:[%s5158_s1 + $0x3a8] ss:$12 sps:$4 sm:$0xff]  }
  0x72   :  { %1310 = vmatmul.mubr.bf16.gmra.mrb[24].mxu0 %v4203_v53  ;;  %3210 = vmatprep.subr.bf16.mxu1 %v3733_v36  ;;  %v3709_v53 = vld [vmem:[%s5158_s1 + $0x2ec] ss:$12 sps:$4 sm:$0xff]   ;;  %v3752_v36 = vld [vmem:[%s5158_s1 + $0x3c4] ss:$12 sps:$4 sm:$0xff]  }
  0x73   :  { %1815 = vmatmul.mubr.bf16.gmra.mrb[40].mxu1 %v4358_v38  ;;  %1355 = vmatpush1.bf16.msra.mxu0 %v3698_v37  ;;  %v31_v37 = vld [vmem:[%s5159_s0 + $0x20] sm:$0xff]  ;;  %v137_v29 = vld [vmem:[%s5159_s0 + $0x370] sm:$0xff] }
  0x74   :  { %1356 = vmatprep.subr.bf16.mxu0 %v3703_v39  ;;  %1319 = vmatprep.mubr.bf16.mxu0 %v4208_v55  ;;  %v3744_v55 = vld [vmem:[%s5158_s1 + $0x398] ss:$12 sps:$4 sm:$0xff]  }
  0x75   :  { %1822 = vmatprep.mubr.bf16.mxu1 %v4366_v41  ;;  %3211 = vmatpush3.bf16.msra.mxu1 %v3734_v42  ;;  %v46_v39 = vld [vmem:[%s5159_s0 + $0x98] sm:$0xff] }
  0x76   :  { %3212 = vmatprep.subr.bf16.mxu1 %v3738_v43  ;;  %v3755_v43 = vld [vmem:[%s5158_s1 + $0x3dc] ss:$12 sps:$4 sm:$0xff]  }
  0x77   :  { %1357 = vmatpush1.bf16.msra.mxu0 %v3701_v40  ;;  %v53_v40 = vld [vmem:[%s5159_s0 + $0xd0] sm:$0xff] }
  0x78   :  { %1358 = vmatprep.subr.bf16.mxu0 %v3706_v44  ;;  %v4579_v44 = vpack.c.bf16 %v53_v40, %v46_v39  ;;  %v54_v39 = vld [vmem:[%s5159_s0 + $0xd8] sm:$0xff]  ;;  %v61_v40 = vld [vmem:[%s5159_s0 + $0x110] sm:$0xff] }
  0x79   :  { %3213 = vmatpush3.bf16.msra.mxu1 %v3739_v49  ;;  %v60_v49 = vld [vmem:[%s5159_s0 + $0x108] sm:$0xff] }
  0x7a   :  { %1320 = vmatmul.mubr.bf16.gmra.mrb[28].mxu0 %v4235_v63  ;;  %3214 = vmatprep.subr.bf16.mxu1 %v3743_v50  ;;  %v107_v63 = vld [vmem:[%s5159_s0 + $0x280] sm:$0xff] }
  0x7b   :  { %1823 = vmatmul.mubr.bf16.gmra.mrb[44].mxu1 %v4402_v52  ;;  %1359 = vmatpush1.bf16.msra.mxu0 %v3704_v51  ;;  %v4448_v3 = vpack.c.bf16 %v107_v63, %v100_v61  ;;  %v67_v50 = vld [vmem:[%s5159_s0 + $0x140] sm:$0xff]  ;;  %v3756_v51 = vld [vmem:[%s5158_s1 + $0x3f0] ss:$12 sps:$4 sm:$0xff]  }
  0x7c   :  { %1360 = vmatprep.subr.bf16.mxu0 %v3709_v53  ;;  %1362 = vmatprep.mubr.bf16.mxu0 %v4240_v1  ;;  %v4443_v1 = vpack.c.bf16 %v92_v60, %v85_v59  ;;  %v3761_v53 = vld [vmem:[%s5158_s1 + $0x40c] ss:$12 sps:$4 sm:$0xff]   ;;  %v81_v60 = vld [vmem:[%s5159_s0 + $0x1b0] sm:$0xff]  ;;  %v3767_v63 = vld [vmem:[%s5158_s1 + $0x43c] ss:$12 sps:$4 sm:$0xff]  }
  0x7d   :  { %1830 = vmatprep.mubr.bf16.mxu1 %v4407_v54  ;;  %3215 = vmatpush3.bf16.msra.mxu1 %v3744_v55  ;;  %v3759_v55 = vld [vmem:[%s5158_s1 + $0x408] ss:$12 sps:$4 sm:$0xff]   ;;  %v74_v59 = vld [vmem:[%s5159_s0 + $0x178] sm:$0xff]  ;;  %v3762_v61 = vld [vmem:[%s5158_s1 + $0x420] ss:$12 sps:$4 sm:$0xff]  }
  0x7e   :  { %3216 = vmatprep.subr.bf16.mxu1 %v3748_v56  ;;  %v3764_v56 = vld [vmem:[%s5158_s1 + $0x424] ss:$12 sps:$4 sm:$0xff]  }
  0x7f   :  { %1361 = vmatpush1.bf16.msra.mxu0 %v3707_v57  ;;  %v59_v57 = vld [vmem:[%s5159_s0 + $0x100] sm:$0xff] }
  0x80   :  { %1443 = vmatprep.subr.bf16.mxu0 %v3712_v58  ;;  %v66_v58 = vld [vmem:[%s5159_s0 + $0x138] sm:$0xff] }
  0x81   :  { %3217 = vmatpush3.bf16.msra.mxu1 %v3749_v62  ;;  %v157_v62 = vpack.c.bf16 %v66_v58, %v59_v57  ;;  %v138_v57 = vld [vmem:[%s5159_s0 + $0x378] sm:$0xff] }
  0x82   :  { %1363 = vmatmul.mubr.bf16.vlgmr.msra.gmra.mrb[0].mxu0 %v4270_v10  ;;  %v3720_v10 = vld [vmem:[%s5158_s1 + $0x330] ss:$12 sps:$4 sm:$0xff]  }
  0x83   :  { %1831 = vmatmul.mubr.bf16.gmra.mrb[48].mxu1 %v4443_v1  ;;  %1444 = vmatpush1.bf16.msra.mxu0 %v3710_v0  ;;  %v165_v0 = vpack.c.bf16 %v81_v60, %v74_v59 }
  0x84   :  { %1445 = vmatprep.subr.bf16.mxu0 %v3717_v2  ;;  %1372 = vmatprep.mubr.bf16.mxu0 %v4278_v13  ;;  %v4480_v13 = vpack.c.bf16 %v121_v9, %v114_v8  ;;  %v3770_v2 = vld [vmem:[%s5158_s1 + $0x454] ss:$12 sps:$4 sm:$0xff]   ;;  %v3773_v9 = vld [vmem:[%s5158_s1 + $0x46c] ss:$12 sps:$4 sm:$0xff]  }
  0x85   :  { %1838 = vmatprep.mubr.bf16.mxu1 %v4448_v3 }
  0x87   :  { %1446 = vmatpush1.bf16.msra.mxu0 %v3715_v4  ;;  %v80_v4 = vld [vmem:[%s5159_s0 + $0x1a8] sm:$0xff] }
  0x88   :  { %1447 = vmatprep.subr.bf16.mxu0 %v3722_v5  ;;  %v88_v5 = vld [vmem:[%s5159_s0 + $0x1e8] sm:$0xff] }
  0x8a   :  { %1373 = vmatmul.mubr.bf16.gmra.mrb[4].mxu0 %v4314_v24  ;;  %v3777_v24 = vld [vmem:[%s5158_s1 + $0x488] ss:$12 sps:$4 sm:$0xff]  }
  0x8b   :  { %1839 = vmatmul.mubr.bf16.gmra.mrb[52].mxu1 %v4475_v11  ;;  %1448 = vmatpush1.bf16.msra.mxu0 %v3720_v10  ;;  %v172_v10 = vpack.c.bf16 %v95_v6, %v88_v5 }
  0x8c   :  { %1449 = vmatprep.subr.bf16.mxu0 %v3727_v12  ;;  %1382 = vmatprep.mubr.bf16.mxu0 %v4322_v27  ;;  %v127_v27 = vld [vmem:[%s5159_s0 + $0x320] sm:$0xff] }
  0x8d   :  { %1846 = vmatprep.mubr.bf16.mxu1 %v4480_v13  ;;  %3371 = vmatprep.subr.bf16.mxu1 %v3777_v24  ;;  %v4542_v32 = vpack.c.bf16 %v134_v28, %v127_v27  ;;  %v3776_v12 = vld [vmem:[%s5158_s1 + $0x484] ss:$12 sps:$4 sm:$0xff]   ;;  %v122_v27 = vld [vmem:[%s5159_s0 + $0x2f8] sm:$0xff] }
  0x8e   :  { %v130_v28 = vld [vmem:[%s5159_s0 + $0x338] sm:$0xff] }
  0x8f   :  { %1450 = vmatpush1.bf16.msra.mxu0 %v3725_v14  ;;  %v94_v14 = vld [vmem:[%s5159_s0 + $0x218] sm:$0xff] }
  0x90   :  { %1451 = vmatprep.subr.bf16.mxu0 %v3732_v15  ;;  %v102_v15 = vld [vmem:[%s5159_s0 + $0x258] sm:$0xff] }
  0x91   :  { %v179_v19 = vpack.c.bf16 %v109_v16, %v102_v15 }
  0x92   :  { %1383 = vmatmul.mubr.bf16.gmra.mrb[8].mxu0 %v4358_v38  ;;  %v38_v38 = vld [vmem:[%s5159_s0 + $0x58] sm:$0xff] }
  0x93   :  { %1847 = vmatmul.mubr.bf16.gmra.mrb[56].mxu1 %v4507_v21  ;;  %1452 = vmatpush1.bf16.msra.mxu0 %v3730_v20  ;;  %v4574_v42 = vpack.c.bf16 %v38_v38, %v31_v37  ;;  %v101_v20 = vld [vmem:[%s5159_s0 + $0x250] sm:$0xff]  ;;  %v47_v38 = vld [vmem:[%s5159_s0 + $0xa0] sm:$0xff] }
  0x94   :  { %1453 = vmatprep.subr.bf16.mxu0 %v3737_v22  ;;  %1392 = vmatprep.mubr.bf16.mxu0 %v4366_v41  ;;  %v3750_v41 = vld [vmem:[%s5158_s1 + $0x3c0] ss:$12 sps:$4 sm:$0xff]  }
  0x95   :  { %1854 = vmatprep.mubr.bf16.mxu1 %v4512_v23  ;;  %v116_v22 = vld [vmem:[%s5159_s0 + $0x2c8] sm:$0xff] }
  0x97   :  { %1454 = vmatpush1.bf16.msra.mxu0 %v3735_v25 }
  0x98   :  { %1455 = vmatprep.subr.bf16.mxu0 %v3742_v26  ;;  %v115_v26 = vld [vmem:[%s5159_s0 + $0x2c0] sm:$0xff] }
  0x99   :  { %v185_v30 = vpack.c.bf16 %v122_v27, %v115_v26 }
  0x9a   :  { %1393 = vmatmul.mubr.bf16.gmra.mrb[12].mxu0 %v4402_v52  ;;  %v4606_v52 = vpack.c.bf16 %v52_v48, %v45_v47  ;;  %v96_v47 = vld [vmem:[%s5159_s0 + $0x228] sm:$0xff] }
  0x9b   :  { %1855 = vmatmul.mubr.bf16.gmra.mrb[60].mxu1 %v4542_v32  ;;  %1456 = vmatpush1.bf16.msra.mxu0 %v3740_v31  ;;  %v193_v31 = vpack.c.bf16 %v137_v29, %v130_v28  ;;  %v3778_v28 = vld [vmem:[%s5160_s3 + $0x80] sm:$0xff]  }
  0x9c   :  { %1457 = vmatprep.subr.bf16.mxu0 %v3747_v33  ;;  %1402 = vmatprep.mubr.bf16.mxu0 %v4407_v54  ;;  %v4611_v54 = vpack.c.bf16 %v67_v50, %v60_v49  ;;  %v136_v33 = vld [vmem:[%s5159_s0 + $0x368] sm:$0xff]  ;;  %v103_v50 = vld [vmem:[%s5159_s0 + $0x260] sm:$0xff] }
  0x9d   :  { %1895 = vmatprep.mubr.bf16.mxu1 %v4547_v34 }
  0x9f   :  { %1458 = vmatpush1.bf16.msra.mxu0 %v3745_v35  ;;  %v40_v35 = vld [vmem:[%s5159_s0 + $0x68] sm:$0xff] }
  0xa0   :  { %1459 = vmatprep.subr.bf16.mxu0 %v3752_v36 }
  0xa2   :  { %1403 = vmatmul.mubr.bf16.gmra.mrb[16].mxu0 %v4443_v1  ;;  %v3765_v1 = vld [vmem:[%s5158_s1 + $0x438] ss:$12 sps:$4 sm:$0xff]  }
  0xa3   :  { %1896 = vmatmul.mubr.bf16.vlgmr.msra.gmra.mrb[64].mxu1 %v4574_v42  ;;  %1460 = vmatpush1.bf16.msra.mxu0 %v3750_v41  ;;  %v68_v41 = vld [vmem:[%s5159_s0 + $0x148] sm:$0xff] }
  0xa4   :  { %1461 = vmatprep.subr.bf16.mxu0 %v3755_v43  ;;  %1412 = vmatprep.mubr.bf16.mxu0 %v4448_v3  ;;  %v73_v3 = vld [vmem:[%s5159_s0 + $0x170] sm:$0xff]  ;;  %v159_v43 = vpack.c.bf16 %v68_v41, %v61_v40 }
  0xa5   :  { %1903 = vmatprep.mubr.bf16.mxu1 %v4579_v44  ;;  %3372 = vmatpush3.bf16.msra.mxu1 %v3777_v24  ;;  %v164_v8 = vpack.c.bf16 %v80_v4, %v73_v3 }
  0xa7   :  { %1462 = vmatpush1.bf16.msra.mxu0 %v3753_v45  ;;  %v82_v45 = vld [vmem:[%s5159_s0 + $0x1b8] sm:$0xff] }
  0xa8   :  { %1463 = vmatprep.subr.bf16.mxu0 %v3758_v46  ;;  %v89_v46 = vld [vmem:[%s5159_s0 + $0x1f0] sm:$0xff] }
  0xa9   :  { %v4757_v49 = vpack.c.bf16 %v96_v47, %v89_v46 }
  0xaa   :  { %1413 = vmatmul.mubr.bf16.gmra.mrb[20].mxu0 %v4475_v11  ;;  %v3771_v11 = vld [vmem:[%s5158_s1 + $0x468] ss:$12 sps:$4 sm:$0xff]  }
  0xab   :  { %1904 = vmatmul.mubr.bf16.gmra.mrb[68].mxu1 %v4606_v52  ;;  %1464 = vmatpush1.bf16.msra.mxu0 %v3756_v51  ;;  %v110_v51 = vld [vmem:[%s5159_s0 + $0x298] sm:$0xff] }
  0xac   :  { %1465 = vmatprep.subr.bf16.mxu0 %v3761_v53  ;;  %1422 = vmatprep.mubr.bf16.mxu0 %v4480_v13  ;;  %v87_v13 = vld [vmem:[%s5159_s0 + $0x1e0] sm:$0xff]  ;;  %v124_v53 = vld [vmem:[%s5159_s0 + $0x308] sm:$0xff] }
  0xad   :  { %1911 = vmatprep.mubr.bf16.mxu1 %v4611_v54  ;;  %v171_v18 = vpack.c.bf16 %v94_v14, %v87_v13 }
  0xaf   :  { %1466 = vmatpush1.bf16.msra.mxu0 %v3759_v55 }
  0xb0   :  { %1467 = vmatprep.subr.bf16.mxu0 %v3764_v56  ;;  %v131_v56 = vld [vmem:[%s5159_s0 + $0x340] sm:$0xff] }
  0xb1   :  { %v4788_v59 = vpack.c.bf16 %v138_v57, %v131_v56 }
  0xb2   :  { %1423 = vmatmul.mubr.bf16.gmra.mrb[24].mxu0 %v4507_v21  ;;  %v108_v21 = vld [vmem:[%s5159_s0 + $0x288] sm:$0xff] }
  0xb3   :  { %1912 = vmatmul.mubr.bf16.gmra.mrb[72].mxu1 %v157_v62  ;;  %1468 = vmatpush1.bf16.msra.mxu0 %v3762_v61  ;;  %v178_v24 = vpack.c.bf16 %v108_v21, %v101_v20 }
  0xb4   :  { %1469 = vmatprep.subr.bf16.mxu0 %v3767_v63  ;;  %1432 = vmatprep.mubr.bf16.mxu0 %v4512_v23  ;;  %v123_v23 = vld [vmem:[%s5159_s0 + $0x300] sm:$0xff] }
  0xb5   :  { %1919 = vmatprep.mubr.bf16.mxu1 %v165_v0  ;;  %v186_v25 = vpack.c.bf16 %v123_v23, %v116_v22 }
  0xb7   :  { %1470 = vmatpush1.bf16.msra.mxu0 %v3765_v1  ;;  %v3810_v1 = vmov 0  }
  0xb8   :  { %1471 = vmatprep.subr.bf16.mxu0 %v3770_v2 }
  0xba   :  { %1433 = vmatmul.mubr.bf16.gmra.mrb[28].mxu0 %v4542_v32  ;;  %v129_v32 = vld [vmem:[%s5159_s0 + $0x330] sm:$0xff] }
  0xbb   :  { %1920 = vmatmul.mubr.bf16.gmra.mrb[76].mxu1 %v164_v8  ;;  %1472 = vmatpush1.bf16.msra.mxu0 %v3768_v7  ;;  %v192_v36 = vpack.c.bf16 %v136_v33, %v129_v32  ;;  %v3779_v33 = vld [vmem:[%s5160_s3 + $0x88] sm:$0xff]  }
  0xbc   :  { %1473 = vmatprep.subr.bf16.mxu0 %v3773_v9  ;;  %1475 = vmatprep.mubr.bf16.mxu0 %v4547_v34  ;;  %v33_v34 = vld [vmem:[%s5159_s0 + $0x30] sm:$0xff] }
  0xbd   :  { %1927 = vmatprep.mubr.bf16.mxu1 %v172_v10  ;;  %v145_v37 = vpack.c.bf16 %v40_v35, %v33_v34  ;;  %v393_v34 = vlaneseq }
  0xbf   :  { %1474 = vmatpush1.bf16.msra.mxu0 %v3771_v11  ;;  %v4839_v41 = vshrl.u32 %v393_v34, 7 }
  0xc0   :  { %1556 = vmatprep.subr.bf16.mxu0 %v3776_v12 }
  0xc2   :  { %1476 = vmatmul.mubr.bf16.vlgmr.msra.gmra.mrb[0].mxu0 %v4574_v42  ;;  %v152_v42 = vpack.c.bf16 %v54_v39, %v47_v38 }
  0xc3   :  { %1928 = vmatmul.mubr.bf16.gmra.mrb[80].mxu1 %v171_v18  ;;  %1557 = vmatpush1.bf16.msra.mxu0 %v3774_v17 }
  0xc4   :  { %1485 = vmatprep.mubr.bf16.mxu0 %v4579_v44  ;;  %1935 = vmatprep.mubr.bf16.mxu1 %v179_v19  ;;  %v75_v44 = vld [vmem:[%s5159_s0 + $0x180] sm:$0xff] }
  0xc5   :  { %v166_v48 = vpack.c.bf16 %v82_v45, %v75_v44  ;;  %3389 = vmatprep.subr.bf16.mxu0 %v3778_v28  ;;  %v4852_v44 = vld [vmem:[%s5161_s2] sm:$0x7]  ;;  %v403_v45 = vsub.s32 2, %v4839_v41 }
  0xca   :  { %1486 = vmatmul.mubr.bf16.gmra.mrb[4].mxu0 %v4606_v52  ;;  %v117_v52 = vld [vmem:[%s5159_s0 + $0x2d0] sm:$0xff] }
  0xcb   :  { %1936 = vmatmul.mubr.bf16.gmra.mrb[84].mxu1 %v178_v24  ;;  %1495 = vmatprep.mubr.bf16.mxu0 %v4611_v54  ;;  %v4774_v54 = vpack.c.bf16 %v110_v51, %v103_v50  ;;  %v4776_v55 = vpack.c.bf16 %v124_v53, %v117_v52  ;;  %v4861_v52 = vrot.slane %v4852_v44, %v403_v45 }
  0xcc   :  { %1943 = vmatprep.mubr.bf16.mxu1 %v186_v25 }
  0xd2   :  { %1496 = vmatmul.mubr.bf16.gmra.mrb[8].mxu0 %v157_v62 }
  0xd3   :  { %1944 = vmatmul.mubr.bf16.gmra.mrb[88].mxu1 %v185_v30  ;;  %1505 = vmatprep.mubr.bf16.mxu0 %v165_v0 }
  0xd4   :  { %1951 = vmatprep.mubr.bf16.mxu1 %v193_v31 }
  0xda   :  { %1506 = vmatmul.mubr.bf16.gmra.mrb[12].mxu0 %v164_v8 }
  0xdb   :  { %1952 = vmatmul.mubr.bf16.gmra.mrb[92].mxu1 %v192_v36  ;;  %1515 = vmatprep.mubr.bf16.mxu0 %v172_v10 }
  0xdc   :  { %3373 = vmatprep.mubr.msk.bf16.mxu1 %vm1192_vm0, %v145_v37 }
  0xe2   :  { %1516 = vmatmul.mubr.bf16.gmra.mrb[16].mxu0 %v171_v18 }
  0xe3   :  { %3374 = vmatmul.mubr.msk.bf16.vlgmr.msra.gmra.mrb[96].mxu1 %vm1192_vm0, %v152_v42  ;;  %1525 = vmatprep.mubr.bf16.mxu0 %v179_v19 }
  0xe4   :  { %3377 = vmatprep.mubr.msk.bf16.mxu1 %vm1192_vm0, %v159_v43 }
  0xea   :  { %1526 = vmatmul.mubr.bf16.gmra.mrb[20].mxu0 %v178_v24 }
  0xeb   :  { %3378 = vmatmul.mubr.msk.bf16.gmra.mrb[100].mxu1 %vm1192_vm0, %v166_v48  ;;  %1535 = vmatprep.mubr.bf16.mxu0 %v186_v25 }
  0xec   :  { %3381 = vmatprep.mubr.msk.bf16.mxu1 %vm1192_vm0, %v4757_v49 }
  0xf2   :  { %1536 = vmatmul.mubr.bf16.gmra.mrb[24].mxu0 %v185_v30 }
  0xf3   :  { %3382 = vmatmul.mubr.msk.bf16.gmra.mrb[104].mxu1 %vm1192_vm0, %v4774_v54  ;;  %1545 = vmatprep.mubr.bf16.mxu0 %v193_v31 }
  0xf4   :  { %3385 = vmatprep.mubr.msk.bf16.mxu1 %vm1192_vm0, %v4776_v55 }
  0xf5   :  { %v3090_v58 = vpop.f32.mrb[0].mxu1 }
  0xf6   :  { %v3091_v60 = vpop.f32.mrb[1].mxu1 }
  0xf7   :  { %v4790_v61 = vadd.f32 %v3091_v60, %v3090_v58  ;;  %v3093_v62 = vpop.f32.mrb[2].mxu1 }
  0xf8   :  { %v3094_v63 = vpop.f32.mrb[3].mxu1 }
  0xf9   :  { %v4792_v0 = vadd.f32 %v3094_v63, %v3093_v62  ;;  %v1704_v56 = vadd.f32 %v4790_v61, %v4861_v52 }
  0xfa   :  { %1546 = vmatmul.mubr.bf16.gmra.mrb[28].mxu0 %v192_v36 }
  0xfb   :  { %3386 = vmatmul.mubr.msk.bf16.gmra.mrb[108].mxu1 %vm1192_vm0, %v4788_v59  ;;  %1588 = vmatprep.mubr.bf16.mxu0 %v3810_v1  ;;  %v1707_v60 = vadd.f32 %v4792_v0, %v4861_v52 }
  0xfd   :  { %v3096_v2 = vpop.f32.mrb[4].mxu1 }
  0xfe   :  { %v3097_v3 = vpop.f32.mrb[5].mxu1 }
  0xff   :  { %v4797_v4 = vadd.f32 %v3097_v3, %v3096_v2  ;;  %v3099_v5 = vpop.f32.mrb[6].mxu1  ;;  %v3785_v3 = vld [vmem:[%s5160_s3 + $0xb8] sm:$0xff]  }
 0x100   :  { %v3100_v6 = vpop.f32.mrb[7].mxu1 }
 0x101   :  { %v4800_v7 = vadd.f32 %v3100_v6, %v3099_v5  ;;  %v1712_v0 = vadd.f32 %v4797_v4, %v4861_v52 }
 0x102   :  { %2945 = vmatmul.mubr.msk.bf16.vlgmr.msra.gmra.mrb[0].mxu0 %vm1192_vm0, %v145_v37  ;;  %v3780_v37 = vld [vmem:[%s5160_s3 + $0x90] sm:$0xff]  }
 0x103   :  { %1598 = vmatprep.mubr.bf16.mxu0 %v3810_v1  ;;  %3390 = vmatpush3.bf16.msra.mxu0 %v3778_v28 }
 0x104   :  { %3391 = vmatprep.subr.bf16.mxu0 %v3779_v33 }
 0x105   :  { %v3102_v8 = vpop.f32.mrb[8].mxu1 }
 0x106   :  { %v3103_v9 = vpop.f32.mrb[9].mxu1 }
 0x107   :  { %v4803_v10 = vadd.f32 %v3103_v9, %v3102_v8  ;;  %v3105_v11 = vpop.f32.mrb[10].mxu1  ;;  %3392 = vmatpush3.bf16.msra.mxu0 %v3779_v33  ;;  %v3786_v9 = vld [vmem:[%s5160_s3 + $0x40] sm:$0xff]  }
 0x108   :  { %v3106_v12 = vpop.f32.mrb[11].mxu1  ;;  %3393 = vmatprep.subr.bf16.mxu0 %v3780_v37  ;;  %3275 = vmatprep.subr.bf16.mxu1 %v3786_v9 }
 0x109   :  { %v4806_v13 = vadd.f32 %v3106_v12, %v3105_v11 }
 0x10a   :  { %2946 = vmatmul.mubr.msk.bf16.gmra.mrb[4].mxu0 %vm1192_vm0, %v152_v42 }
 0x10b   :  { %1608 = vmatprep.mubr.bf16.mxu0 %v3810_v1  ;;  %3394 = vmatpush3.bf16.msra.mxu0 %v3780_v37 }
 0x10d   :  { %v3108_v14 = vpop.f32.mrb[12].mxu1 }
 0x10e   :  { %v3109_v15 = vpop.f32.mrb[13].mxu1 }
 0x10f   :  { %v4809_v16 = vadd.f32 %v3109_v15, %v3108_v14  ;;  %v3111_v17 = vpop.f32.mrb[14].mxu1  ;;  %v3787_v14 = vld [vmem:[%s5160_s3] sm:$0xff]  }
 0x110   :  { %v3112_v18 = vpop.f32.mrb[15].mxu1  ;;  %3276 = vmatpush3.bf16.msra.mxu1 %v3787_v14 }
 0x111   :  { %v4812_v19 = vadd.f32 %v3112_v18, %v3111_v17  ;;  %v3788_v18 = vld [vmem:[%s5160_s3 + $0x48] sm:$0xff]   ;;  %v1728_v37 = vadd.f32 %v4809_v16, %v4861_v52 }
 0x112   :  { %2947 = vmatmul.mubr.msk.bf16.gmra.mrb[8].mxu0 %vm1192_vm0, %v159_v43  ;;  %v3781_v43 = vld [vmem:[%s5160_s3 + $0x98] sm:$0xff]   ;;  %3277 = vmatprep.subr.bf16.mxu1 %v3788_v18 }
 0x113   :  { %1618 = vmatprep.mubr.bf16.mxu0 %v3810_v1  ;;  %3395 = vmatprep.subr.bf16.mxu0 %v3781_v43  ;;  %v1731_v45 = vadd.f32 %v4812_v19, %v4861_v52  ;;  %v3797_v19 = vld [vmem:[%s5160_s3 + $0x28] sm:$0xff]  }
 0x114   :  { %3396 = vmatpush3.bf16.msra.mxu0 %v3781_v43  ;;  %v3794_v43 = vld [vmem:[%s5160_s3 + $0x60] sm:$0xff]  }
 0x115   :  { %v3114_v20 = vpop.f32.mrb[16].mxu1 }
 0x116   :  { %v3115_v21 = vpop.f32.mrb[17].mxu1 }
 0x117   :  { %v4815_v22 = vadd.f32 %v3115_v21, %v3114_v20  ;;  %v3117_v23 = vpop.f32.mrb[18].mxu1  ;;  %v1720_v21 = vadd.f32 %v4803_v10, %v4861_v52 }
 0x118   :  { %v3118_v24 = vpop.f32.mrb[19].mxu1 }
 0x119   :  { %v4818_v25 = vadd.f32 %v3118_v24, %v3117_v23 }
 0x11a   :  { %2948 = vmatmul.mubr.msk.bf16.gmra.mrb[12].mxu0 %vm1192_vm0, %v166_v48  ;;  %v3782_v48 = vld [vmem:[%s5160_s3 + $0xa0] sm:$0xff]  }
 0x11b   :  { %1628 = vmatprep.mubr.bf16.mxu0 %v3810_v1  ;;  %3397 = vmatprep.subr.bf16.mxu0 %v3782_v48 }
 0x11c   :  { %3398 = vmatpush3.bf16.msra.mxu0 %v3782_v48  ;;  %v3795_v48 = vld [vmem:[%s5160_s3 + $0x20] sm:$0xff]  }
 0x11d   :  { %v3120_v26 = vpop.f32.mrb[20].mxu1 }
 0x11e   :  { %v3121_v27 = vpop.f32.mrb[21].mxu1 }
 0x11f   :  { %v4824_v29 = vadd.f32 %v3121_v27, %v3120_v26  ;;  %v3123_v30 = vpop.f32.mrb[22].mxu1  ;;  %v3790_v26 = vld [vmem:[%s5160_s3 + $0x50] sm:$0xff]   ;;  %v1723_v27 = vadd.f32 %v4806_v13, %v4861_v52  ;;  %v3793_v13 = vld [vmem:[%s5160_s3 + $0x18] sm:$0xff]  }
 0x120   :  { %v3124_v31 = vpop.f32.mrb[23].mxu1 }
 0x121   :  { %v4828_v32 = vadd.f32 %v3124_v31, %v3123_v30  ;;  %v3791_v31 = vld [vmem:[%s5160_s3 + $0x10] sm:$0xff]   ;;  %v1744_v9 = vadd.f32 %v4824_v29, %v4861_v52 }
 0x122   :  { %2949 = vmatmul.mubr.msk.bf16.gmra.mrb[16].mxu0 %vm1192_vm0, %v4757_v49 }
 0x123   :  { %1638 = vmatprep.mubr.bf16.mxu0 %v3810_v1 }
 0x125   :  { %v3126_v35 = vpop.f32.mrb[24].mxu1 }
 0x126   :  { %v3127_v36 = vpop.f32.mrb[25].mxu1 }
 0x127   :  { %v4837_v38 = vadd.f32 %v3127_v36, %v3126_v35  ;;  %v3129_v39 = vpop.f32.mrb[26].mxu1  ;;  %v3792_v35 = vld [vmem:[%s5160_s3 + $0x58] sm:$0xff]  }
 0x128   :  { %v3130_v40 = vpop.f32.mrb[27].mxu1 }
 0x129   :  { %v4843_v42 = vadd.f32 %v3130_v40, %v3129_v39 }
 0x12a   :  { %2950 = vmatmul.mubr.msk.bf16.gmra.mrb[20].mxu0 %vm1192_vm0, %v4774_v54  ;;  %v3783_v54 = vld [vmem:[%s5160_s3 + $0xa8] sm:$0xff]  }
 0x12b   :  { %1648 = vmatprep.mubr.bf16.mxu0 %v3810_v1  ;;  %3399 = vmatprep.subr.bf16.mxu0 %v3783_v54  ;;  %v1755_v29 = vadd.f32 %v4843_v42, %v4861_v52 }
 0x12c   :  { %3400 = vmatpush3.bf16.msra.mxu0 %v3783_v54  ;;  %v3796_v54 = vld [vmem:[%s5160_s3 + $0x68] sm:$0xff]  }
 0x12d   :  { %v3132_v46 = vpop.f32.mrb[28].mxu1 }
 0x12e   :  { %v3133_v47 = vpop.f32.mrb[29].mxu1 }
 0x12f   :  { %v4858_v49 = vadd.f32 %v3133_v47, %v3132_v46  ;;  %v3135_v50 = vpop.f32.mrb[30].mxu1 }
 0x130   :  { %v3136_v51 = vpop.f32.mrb[31].mxu1 }
 0x131   :  { %v4865_v53 = vadd.f32 %v3136_v51, %v3135_v50 }
 0x132   :  { %2951 = vmatmul.mubr.msk.bf16.gmra.mrb[24].mxu0 %vm1192_vm0, %v4776_v55  ;;  %v3784_v55 = vld [vmem:[%s5160_s3 + $0xb0] sm:$0xff]  }
 0x133   :  { %1658 = vmatprep.mubr.bf16.mxu0 %v3810_v1  ;;  %3401 = vmatprep.subr.bf16.mxu0 %v3784_v55 }
 0x134   :  { %3402 = vmatpush3.bf16.msra.mxu0 %v3784_v55 }
 0x135   :  { %v3154_v57 = vpop.f32.mrb[32].mxu1  ;;  %3403 = vmatprep.subr.bf16.mxu0 %v3785_v3 }
 0x136   :  { %v3155_v58 = vpop.f32.mrb[33].mxu1 }
 0x137   :  { %v3156_v62 = vadd.f32 %v3155_v58, %v3154_v57  ;;  %v3157_v63 = vpop.f32.mrb[34].mxu1  ;;  %v1736_v57 = vadd.f32 %v4815_v22, %v4861_v52 }
 0x138   :  { %v3158_v2 = vpop.f32.mrb[35].mxu1  ;;  %3404 = vmatpush3.bf16.msra.mxu0 %v3785_v3 }
 0x139   :  { %v4878_v1 = vadd.f32 %v3156_v62, %v1704_v56  ;;  %v3159_v61 = vadd.f32 %v3158_v2, %v3157_v63  ;;  %v1739_v62 = vadd.f32 %v4818_v25, %v4861_v52  ;;  %v3801_v25 = vld [vmem:[%s5160_s3 + $0x38] sm:$0xff]  }
 0x13a   :  { %2952 = vmatmul.mubr.msk.bf16.gmra.mrb[28].mxu0 %vm1192_vm0, %v4788_v59  ;;  %v1715_v59 = vadd.f32 %v4800_v7, %v4861_v52  ;;  %v3789_v7 = vld [vmem:[%s5160_s3 + $0x8] sm:$0xff]  }
 0x13b   :  { %v4885_v5 = vadd.f32 %v3159_v61, %v1707_v60  ;;  %3278 = vmatpush3.bf16.msra.mxu1 %v3789_v7  ;;  %v3798_v60 = vld [vmem:[%s5160_s3 + $0x70] sm:$0xff]  }
 0x13c   :  { %3279 = vmatprep.subr.bf16.mxu1 %v3790_v26  ;;  %v3799_v61 = vld [vmem:[%s5160_s3 + $0x30] sm:$0xff]  }
 0x13e   :  { %v3160_v6 = vpop.f32.mrb[36].mxu1 }
 0x13f   :  { %v3161_v8 = vpop.f32.mrb[37].mxu1  ;;  %3280 = vmatpush3.bf16.msra.mxu1 %v3791_v31 }
 0x140   :  { %v3162_v11 = vadd.f32 %v3161_v8, %v3160_v6  ;;  %v3163_v12 = vpop.f32.mrb[38].mxu1  ;;  %3281 = vmatprep.subr.bf16.mxu1 %v3792_v35  ;;  %v3800_v6 = vld [vmem:[%s5160_s3 + $0x78] sm:$0xff]  }
 0x141   :  { %v3164_v15 = vpop.f32.mrb[39].mxu1 }
 0x142   :  { %v4897_v17 = vadd.f32 %v3162_v11, %v1712_v0  ;;  %v3165_v4 = vadd.f32 %v3164_v15, %v3163_v12  ;;  %v1747_v12 = vadd.f32 %v4828_v32, %v4861_v52 }
 0x143   :  { %3282 = vmatpush3.bf16.msra.mxu1 %v3793_v13 }
 0x144   :  { %v4902_v20 = vadd.f32 %v3165_v4, %v1715_v59  ;;  %3283 = vmatprep.subr.bf16.mxu1 %v3794_v43 }
 0x146   :  { %v3166_v23 = vpop.f32.mrb[40].mxu1 }
 0x147   :  { %v3167_v24 = vpop.f32.mrb[41].mxu1  ;;  %3284 = vmatpush3.bf16.msra.mxu1 %v3795_v48 }
 0x148   :  { %v3168_v28 = vadd.f32 %v3167_v24, %v3166_v23  ;;  %v3169_v30 = vpop.f32.mrb[42].mxu1  ;;  %3285 = vmatprep.subr.bf16.mxu1 %v3796_v54  ;;  %v1752_v23 = vadd.f32 %v4837_v38, %v4861_v52  ;;  %v1763_v38 = vadd.f32 %v4865_v53, %v4861_v52 }
 0x149   :  { %v3170_v33 = vpop.f32.mrb[43].mxu1 }
 0x14a   :  { %v4917_v34 = vadd.f32 %v3168_v28, %v1720_v21  ;;  %v3171_v10 = vadd.f32 %v3170_v33, %v3169_v30 }
 0x14b   :  { %3286 = vmatpush3.bf16.msra.mxu1 %v3797_v19 }
 0x14c   :  { %v4922_v36 = vadd.f32 %v3171_v10, %v1723_v27  ;;  %3287 = vmatprep.subr.bf16.mxu1 %v3798_v60  ;;  %v1760_v10 = vadd.f32 %v4858_v49, %v4861_v52 }
 0x14e   :  { %v3172_v39 = vpop.f32.mrb[44].mxu1 }
 0x14f   :  { %v3173_v40 = vpop.f32.mrb[45].mxu1  ;;  %3288 = vmatpush3.bf16.msra.mxu1 %v3799_v61 }
 0x150   :  { %v3174_v46 = vadd.f32 %v3173_v40, %v3172_v39  ;;  %v3175_v47 = vpop.f32.mrb[46].mxu1  ;;  %3289 = vmatprep.subr.bf16.mxu1 %v3800_v6 }
 0x151   :  { %v3176_v50 = vpop.f32.mrb[47].mxu1 }
 0x152   :  { %v4937_v51 = vadd.f32 %v3174_v46, %v1728_v37  ;;  %v3177_v16 = vadd.f32 %v3176_v50, %v3175_v47 }
 0x153   :  { %3290 = vmatpush3.bf16.msra.mxu1 %v3801_v25 }
 0x154   :  { %v4942_v56 = vadd.f32 %v3177_v16, %v1731_v45 }
 0x156   :  { %v3178_v58 = vpop.f32.mrb[48].mxu1 }
 0x157   :  { %v3179_v55 = vpop.f32.mrb[49].mxu1 }
 0x158   :  { %v3180_v63 = vadd.f32 %v3179_v55, %v3178_v58  ;;  %v3181_v2 = vpop.f32.mrb[50].mxu1 }
 0x159   :  { %v3182_v3 = vpop.f32.mrb[51].mxu1 }
 0x15a   :  { %v4957_v0 = vadd.f32 %v3180_v63, %v1736_v57  ;;  %v3183_v22 = vadd.f32 %v3182_v3, %v3181_v2 }
 0x15c   :  { %v4962_v8 = vadd.f32 %v3183_v22, %v1739_v62 }
 0x15e   :  { %v3184_v59 = vpop.f32.mrb[52].mxu1 }
 0x15f   :  { %v3185_v11 = vpop.f32.mrb[53].mxu1 }
 0x160   :  { %v3186_v14 = vadd.f32 %v3185_v11, %v3184_v59  ;;  %v3187_v15 = vpop.f32.mrb[54].mxu1 }
 0x161   :  { %v3188_v4 = vpop.f32.mrb[55].mxu1 }
 0x162   :  { %v4971_v18 = vadd.f32 %v3186_v14, %v1744_v9  ;;  %v3189_v7 = vadd.f32 %v3188_v4, %v3187_v15 }
 0x164   :  { %v4973_v21 = vadd.f32 %v3189_v7, %v1747_v12 }
 0x166   :  { %v3190_v24 = vpop.f32.mrb[56].mxu1 }
 0x167   :  { %v3191_v26 = vpop.f32.mrb[57].mxu1 }
 0x168   :  { %v3192_v27 = vadd.f32 %v3191_v26, %v3190_v24  ;;  %v3193_v28 = vpop.f32.mrb[58].mxu1 }
 0x169   :  { %v3194_v30 = vpop.f32.mrb[59].mxu1 }
 0x16a   :  { %v4979_v32 = vadd.f32 %v3192_v27, %v1752_v23  ;;  %v3195_v31 = vadd.f32 %v3194_v30, %v3193_v28 }
 0x16c   :  { %v4981_v33 = vadd.f32 %v3195_v31, %v1755_v29 }
 0x16e   :  { %v3196_v35 = vpop.f32.mrb[60].mxu1 }
 0x16f   :  { %v3197_v13 = vpop.f32.mrb[61].mxu1 }
 0x170   :  { %v3198_v37 = vadd.f32 %v3197_v13, %v3196_v35  ;;  %v3199_v39 = vpop.f32.mrb[62].mxu1 }
 0x171   :  { %v3200_v40 = vpop.f32.mrb[63].mxu1 }
 0x172   :  { %v4987_v42 = vadd.f32 %v3198_v37, %v1760_v10  ;;  %v3201_v43 = vadd.f32 %v3200_v40, %v3199_v39 }
 0x174   :  { %v4989_v45 = vadd.f32 %v3201_v43, %v1763_v38 }
 0x176   :  { %v3218_v46 = vpop.f32.mrb[64].mxu1 }
 0x177   :  { %v3219_v47 = vpop.f32.mrb[65].mxu1 }
 0x178   :  { %v3220_v48 = vadd.f32 %v3219_v47, %v3218_v46  ;;  %v3221_v50 = vpop.f32.mrb[66].mxu1 }
 0x179   :  { %v3222_v16 = vpop.f32.mrb[67].mxu1 }
 0x17a   :  { %v3223_v54 = vadd.f32 %v3222_v16, %v3221_v50  ;;  %v1898_v49 = vadd.f32 %v3220_v48, %v4878_v1 }
 0x17c   :  { %v4993_v19 = vadd.f32 %v3223_v54, %v4885_v5 }
 0x17e   :  { %v3224_v52 = vpop.f32.mrb[68].mxu1 }
 0x17f   :  { %v3225_v53 = vpop.f32.mrb[69].mxu1 }
 0x180   :  { %v3226_v57 = vadd.f32 %v3225_v53, %v3224_v52  ;;  %v3227_v58 = vpop.f32.mrb[70].mxu1 }
 0x181   :  { %v3228_v55 = vpop.f32.mrb[71].mxu1 }
 0x182   :  { %v3229_v60 = vadd.f32 %v3228_v55, %v3227_v58  ;;  %v1906_v62 = vadd.f32 %v3226_v57, %v4897_v17 }
 0x184   :  { %v1909_v63 = vadd.f32 %v3229_v60, %v4902_v20 }
 0x186   :  { %v3230_v2 = vpop.f32.mrb[72].mxu1 }
 0x187   :  { %v3231_v61 = vpop.f32.mrb[73].mxu1 }
 0x188   :  { %v3232_v3 = vadd.f32 %v3231_v61, %v3230_v2  ;;  %v3233_v22 = vpop.f32.mrb[74].mxu1 }
 0x189   :  { %v3234_v6 = vpop.f32.mrb[75].mxu1 }
 0x18a   :  { %v3235_v25 = vadd.f32 %v3234_v6, %v3233_v22  ;;  %v1914_v1 = vadd.f32 %v3232_v3, %v4917_v34 }
 0x18c   :  { %v4999_v5 = vadd.f32 %v3235_v25, %v4922_v36 }
 0x18e   :  { %v3236_v9 = vpop.f32.mrb[76].mxu1 }
 0x18f   :  { %v3237_v59 = vpop.f32.mrb[77].mxu1 }
 0x190   :  { %v3238_v11 = vadd.f32 %v3237_v59, %v3236_v9  ;;  %v3239_v12 = vpop.f32.mrb[78].mxu1 }
 0x191   :  { %v3240_v14 = vpop.f32.mrb[79].mxu1 }
 0x192   :  { %v3241_v15 = vadd.f32 %v3240_v14, %v3239_v12  ;;  %v1922_v17 = vadd.f32 %v3238_v11, %v4937_v51 }
 0x194   :  { %v1925_v20 = vadd.f32 %v3241_v15, %v4942_v56 }
 0x196   :  { %v3242_v4 = vpop.f32.mrb[80].mxu1 }
 0x197   :  { %v3243_v7 = vpop.f32.mrb[81].mxu1 }
 0x198   :  { %v3244_v23 = vadd.f32 %v3243_v7, %v3242_v4  ;;  %v3245_v24 = vpop.f32.mrb[82].mxu1 }
 0x199   :  { %v3246_v26 = vpop.f32.mrb[83].mxu1 }
 0x19a   :  { %v3247_v29 = vadd.f32 %v3246_v26, %v3245_v24  ;;  %v1930_v34 = vadd.f32 %v3244_v23, %v4957_v0 }
 0x19c   :  { %v5005_v36 = vadd.f32 %v3247_v29, %v4962_v8 }
 0x19e   :  { %v3248_v27 = vpop.f32.mrb[84].mxu1 }
 0x19f   :  { %v3249_v28 = vpop.f32.mrb[85].mxu1 }
 0x1a0   :  { %v3250_v30 = vadd.f32 %v3249_v28, %v3248_v27  ;;  %v3251_v31 = vpop.f32.mrb[86].mxu1 }
 0x1a1   :  { %v3252_v10 = vpop.f32.mrb[87].mxu1 }
 0x1a2   :  { %v3253_v35 = vadd.f32 %v3252_v10, %v3251_v31  ;;  %v1938_v51 = vadd.f32 %v3250_v30, %v4971_v18 }
 0x1a4   :  { %v1941_v56 = vadd.f32 %v3253_v35, %v4973_v21 }
 0x1a6   :  { %v3254_v13 = vpop.f32.mrb[88].mxu1 }
 0x1a7   :  { %v3255_v38 = vpop.f32.mrb[89].mxu1 }
 0x1a8   :  { %v3256_v37 = vadd.f32 %v3255_v38, %v3254_v13  ;;  %v3257_v39 = vpop.f32.mrb[90].mxu1  ;;  %v395_v38 = vsub.s32 0, %v4839_v41 }
 0x1a9   :  { %v3258_v40 = vpop.f32.mrb[91].mxu1 }
 0x1aa   :  { %v3259_v43 = vadd.f32 %v3258_v40, %v3257_v39  ;;  %v1946_v0 = vadd.f32 %v3256_v37, %v4979_v32 }
 0x1ac   :  { %v5011_v8 = vadd.f32 %v3259_v43, %v4981_v33 }
 0x1ae   :  { %v3260_v46 = vpop.f32.mrb[92].mxu1 }
 0x1af   :  { %v3261_v47 = vpop.f32.mrb[93].mxu1 }
 0x1b0   :  { %v3262_v48 = vadd.f32 %v3261_v47, %v3260_v46  ;;  %v3263_v50 = vpop.f32.mrb[94].mxu1  ;;  %v5022_v46 = vrot.slane %v4852_v44, %v395_v38 }
 0x1b1   :  { %v3264_v16 = vpop.f32.mrb[95].mxu1 }
 0x1b2   :  { %v3265_v54 = vadd.f32 %v3264_v16, %v3263_v50  ;;  %v1954_v18 = vadd.f32 %v3262_v48, %v4987_v42 }
 0x1b4   :  { %v1957_v21 = vadd.f32 %v3265_v54, %v4989_v45 }
 0x1b6   :  { %v3375_v52 = vpop.f32.mrb[96].mxu1 }
 0x1b7   :  { %v2003_v53 = vadd.f32 %v3375_v52, %v1906_v62  ;;  %v1994_v57 = vpop.f32.mrb[97].mxu1 }
 0x1b8   :  { %v1995_v58 = vadd.f32 %v1994_v57, %v1898_v49  ;;  %v3376_v55 = vpop.f32.mrb[98].mxu1 }
 0x1b9   :  { %v2006_v60 = vadd.f32 %v3376_v55, %v1909_v63  ;;  %v1997_v32 = vpop.f32.mrb[99].mxu1  ;;  %v2065_v2 = vmax.f32 %v2003_v53, 0.0 }
 0x1ba   :  { %v1998_v33 = vadd.f32 %v1997_v32, %v4993_v19  ;;  %v2059_v3 = vmax.f32 %v1995_v58, 0.0 }
 0x1bb   :  { %v2068_v61 = vmax.f32 %v2006_v60, 0.0 }
 0x1bc   :  { %v2062_v22 = vmax.f32 %v1998_v33, 0.0 }
 0x1bd   :  { %v2110_v6 = vpack.c.bf16 %v2068_v61, %v2065_v2 }
 0x1be   :  { %v2107_v25 = vpack.c.bf16 %v2062_v22, %v2059_v3  ;;  %v3379_v9 = vpop.f32.mrb[100].mxu1 }
 0x1bf   :  { %v2019_v59 = vadd.f32 %v3379_v9, %v1922_v17  ;;  %v2010_v42 = vpop.f32.mrb[101].mxu1 }
 0x1c0   :  { %v2011_v11 = vadd.f32 %v2010_v42, %v1914_v1  ;;  %v3380_v45 = vpop.f32.mrb[102].mxu1  ;;  %3405 = vmatprep.mubr.bf16.mxu0 %v2107_v25 }
 0x1c1   :  { %v2022_v62 = vadd.f32 %v3380_v45, %v1925_v20  ;;  %v2013_v12 = vpop.f32.mrb[103].mxu1  ;;  %3406 = vmatmul.mubr.bf16.vlgmr.msra.gmra.mrb[32].mxu0 %v2110_v6  ;;  %v2077_v63 = vmax.f32 %v2019_v59, 0.0 }
 0x1c2   :  { %v2014_v49 = vadd.f32 %v2013_v12, %v4999_v5  ;;  %v2071_v19 = vmax.f32 %v2011_v11, 0.0 }
 0x1c3   :  { %v2080_v14 = vmax.f32 %v2022_v62, 0.0 }
 0x1c4   :  { %v2074_v15 = vmax.f32 %v2014_v49, 0.0 }
 0x1c5   :  { %v2116_v4 = vpack.c.bf16 %v2080_v14, %v2077_v63 }
 0x1c6   :  { %v2113_v7 = vpack.c.bf16 %v2074_v15, %v2071_v19  ;;  %v3383_v23 = vpop.f32.mrb[104].mxu1 }
 0x1c7   :  { %v2035_v24 = vadd.f32 %v3383_v23, %v1938_v51  ;;  %v2026_v26 = vpop.f32.mrb[105].mxu1 }
 0x1c8   :  { %v2027_v29 = vadd.f32 %v2026_v26, %v1930_v34  ;;  %v3384_v17 = vpop.f32.mrb[106].mxu1  ;;  %3409 = vmatprep.mubr.bf16.mxu0 %v2113_v7  ;;  %v399_v34 = vsub.s32 1, %v4839_v41 }
 0x1c9   :  { %v2038_v1 = vadd.f32 %v3384_v17, %v1941_v56  ;;  %v2029_v27 = vpop.f32.mrb[107].mxu1  ;;  %3410 = vmatmul.mubr.bf16.gmra.mrb[36].mxu0 %v2116_v4  ;;  %v2089_v28 = vmax.f32 %v2035_v24, 0.0 }
 0x1ca   :  { %v2030_v20 = vadd.f32 %v2029_v27, %v5005_v36  ;;  %v2083_v5 = vmax.f32 %v2027_v29, 0.0  ;;  %v5025_v50 = vrot.slane %v4852_v44, %v399_v34 }
 0x1cb   :  { %v2092_v30 = vmax.f32 %v2038_v1, 0.0 }
 0x1cc   :  { %v2086_v31 = vmax.f32 %v2030_v20, 0.0 }
 0x1cd   :  { %v2122_v10 = vpack.c.bf16 %v2092_v30, %v2089_v28 }
 0x1ce   :  { %v2119_v35 = vpack.c.bf16 %v2086_v31, %v2083_v5  ;;  %v3387_v13 = vpop.f32.mrb[108].mxu1 }
 0x1cf   :  { %v2051_v37 = vadd.f32 %v3387_v13, %v1954_v18  ;;  %v2042_v51 = vpop.f32.mrb[109].mxu1 }
 0x1d0   :  { %v2043_v39 = vadd.f32 %v2042_v51, %v1946_v0  ;;  %v3388_v40 = vpop.f32.mrb[110].mxu1  ;;  %3413 = vmatprep.mubr.bf16.mxu0 %v2119_v35 }
 0x1d1   :  { %v2054_v56 = vadd.f32 %v3388_v40, %v1957_v21  ;;  %v2045_v43 = vpop.f32.mrb[111].mxu1  ;;  %3414 = vmatmul.mubr.bf16.gmra.mrb[40].mxu0 %v2122_v10  ;;  %v2101_v47 = vmax.f32 %v2051_v37, 0.0 }
 0x1d2   :  { %v2046_v36 = vadd.f32 %v2045_v43, %v5011_v8  ;;  %v2095_v16 = vmax.f32 %v2043_v39, 0.0 }
 0x1d3   :  { %v2104_v48 = vmax.f32 %v2054_v56, 0.0 }
 0x1d4   :  { %v2098_v54 = vmax.f32 %v2046_v36, 0.0 }
 0x1d5   :  { %v2128_v18 = vpack.c.bf16 %v2104_v48, %v2101_v47  ;;  %v1590_v41 = vpop.f32.mrb[0].mxu0 }
 0x1d6   :  { %v2125_v0 = vpack.c.bf16 %v2098_v54, %v2095_v16  ;;  %v3453_v52 = vadd.f32 %v1590_v41, %v5022_v46  ;;  %v1592_v21 = vpop.f32.mrb[1].mxu0 }
 0x1d7   :  { %v3454_v53 = vadd.f32 %v1592_v21, %v5025_v50  ;;  %v1594_v57 = vpop.f32.mrb[2].mxu0 }
 0x1d8   :  { %v3455_v8 = vadd.f32 %v1594_v57, %v5022_v46  ;;  %3417 = vmatprep.mubr.bf16.mxu0 %v2125_v0  ;;  %v1596_v58 = vpop.f32.mrb[3].mxu0  ;;  %v2057_v44 = vmax.f32 %v3453_v52, 0.0 }
 0x1d9   :  { %v3456_v55 = vadd.f32 %v1596_v58, %v5025_v50  ;;  %3418 = vmatmul.mubr.bf16.gmra.mrb[44].mxu0 %v2128_v18  ;;  %v2058_v32 = vmax.f32 %v3454_v53, 0.0 }
 0x1da   :  { %v2060_v60 = vmax.f32 %v3455_v8, 0.0 }
 0x1db   :  { %v2061_v33 = vmax.f32 %v3456_v55, 0.0 }
 0x1dc   :  { %v2105_v2 = vpack.c.bf16 %v2060_v60, %v2057_v44 }
 0x1dd   :  { %v2106_v61 = vpack.c.bf16 %v2061_v33, %v2058_v32  ;;  %v1600_v3 = vpop.f32.mrb[4].mxu0 }
 0x1de   :  { %v3457_v22 = vadd.f32 %v1600_v3, %v5022_v46  ;;  %v1602_v6 = vpop.f32.mrb[5].mxu0 }
 0x1df   :  { %v3458_v25 = vadd.f32 %v1602_v6, %v5025_v50  ;;  %v1604_v9 = vpop.f32.mrb[6].mxu0  ;;  %2360 = vmatprep.mubr.bf16.mxu1 %v2106_v61 }
 0x1e0   :  { %v3459_v59 = vadd.f32 %v1604_v9, %v5022_v46  ;;  %v1606_v42 = vpop.f32.mrb[7].mxu0  ;;  %2361 = vmatmul.mubr.bf16.vlgmr.msra.gmra.mrb[112].mxu1 %v2105_v2  ;;  %v2063_v45 = vmax.f32 %v3457_v22, 0.0 }
 0x1e1   :  { %v3460_v11 = vadd.f32 %v1606_v42, %v5025_v50  ;;  %v2064_v12 = vmax.f32 %v3458_v25, 0.0 }
 0x1e2   :  { %v2066_v62 = vmax.f32 %v3459_v59, 0.0 }
 0x1e3   :  { %v2067_v49 = vmax.f32 %v3460_v11, 0.0 }
 0x1e4   :  { %v2108_v63 = vpack.c.bf16 %v2066_v62, %v2063_v45 }
 0x1e5   :  { %v2109_v14 = vpack.c.bf16 %v2067_v49, %v2064_v12  ;;  %v1610_v19 = vpop.f32.mrb[8].mxu0 }
 0x1e6   :  { %v3461_v15 = vadd.f32 %v1610_v19, %v5022_v46  ;;  %v1612_v4 = vpop.f32.mrb[9].mxu0 }
 0x1e7   :  { %v3462_v7 = vadd.f32 %v1612_v4, %v5025_v50  ;;  %v1614_v23 = vpop.f32.mrb[10].mxu0  ;;  %2368 = vmatprep.mubr.bf16.mxu1 %v2109_v14 }
 0x1e8   :  { %v3463_v24 = vadd.f32 %v1614_v23, %v5022_v46  ;;  %v1616_v26 = vpop.f32.mrb[11].mxu0  ;;  %2369 = vmatmul.mubr.bf16.gmra.mrb[116].mxu1 %v2108_v63  ;;  %v2069_v17 = vmax.f32 %v3461_v15, 0.0 }
 0x1e9   :  { %v3464_v29 = vadd.f32 %v1616_v26, %v5025_v50  ;;  %v2070_v27 = vmax.f32 %v3462_v7, 0.0 }
 0x1ea   :  { %v2072_v1 = vmax.f32 %v3463_v24, 0.0 }
 0x1eb   :  { %v2073_v20 = vmax.f32 %v3464_v29, 0.0 }
 0x1ec   :  { %v2111_v28 = vpack.c.bf16 %v2072_v1, %v2069_v17 }
 0x1ed   :  { %v2112_v30 = vpack.c.bf16 %v2073_v20, %v2070_v27  ;;  %v1620_v5 = vpop.f32.mrb[12].mxu0 }
 0x1ee   :  { %v3465_v31 = vadd.f32 %v1620_v5, %v5022_v46  ;;  %v1622_v10 = vpop.f32.mrb[13].mxu0 }
 0x1ef   :  { %v3466_v35 = vadd.f32 %v1622_v10, %v5025_v50  ;;  %v1624_v13 = vpop.f32.mrb[14].mxu0  ;;  %2376 = vmatprep.mubr.bf16.mxu1 %v2112_v30 }
 0x1f0   :  { %v3467_v38 = vadd.f32 %v1624_v13, %v5022_v46  ;;  %v1626_v37 = vpop.f32.mrb[15].mxu0  ;;  %2377 = vmatmul.mubr.bf16.gmra.mrb[120].mxu1 %v2111_v28  ;;  %v2075_v34 = vmax.f32 %v3465_v31, 0.0 }
 0x1f1   :  { %v3468_v51 = vadd.f32 %v1626_v37, %v5025_v50  ;;  %v2076_v40 = vmax.f32 %v3466_v35, 0.0 }
 0x1f2   :  { %v2078_v39 = vmax.f32 %v3467_v38, 0.0 }
 0x1f3   :  { %v2079_v56 = vmax.f32 %v3468_v51, 0.0 }
 0x1f4   :  { %v2114_v43 = vpack.c.bf16 %v2078_v39, %v2075_v34  ;;  %v3802_v34 = vld [vmem:[%s5162_s5] sm:$0xff]   ;;  %v3805_v39 = vld [vmem:[%s5162_s5 + $0x18] sm:$0xff]  }
 0x1f5   :  { %v2115_v36 = vpack.c.bf16 %v2079_v56, %v2076_v40  ;;  %v1630_v47 = vpop.f32.mrb[16].mxu0  ;;  %3421 = vmatprep.subr.bf16.mxu1 %v3802_v34  ;;  %v3806_v40 = vld [vmem:[%s5162_s5 + $0x20] sm:$0xff]   ;;  %v3807_v56 = vld [vmem:[%s5162_s5 + $0x28] sm:$0xff]  }
 0x1f6   :  { %v3469_v48 = vadd.f32 %v1630_v47, %v5022_v46  ;;  %v1632_v16 = vpop.f32.mrb[17].mxu0  ;;  %3422 = vmatpush3.bf16.msra.mxu1 %v3802_v34 }
 0x1f7   :  { %v3470_v54 = vadd.f32 %v1632_v16, %v5025_v50  ;;  %v1634_v18 = vpop.f32.mrb[18].mxu0  ;;  %2384 = vmatprep.mubr.bf16.mxu1 %v2115_v36  ;;  %v3809_v36 = vld [vmem:[%s5162_s5 + $0x38] sm:$0xff]  }
 0x1f8   :  { %v3471_v41 = vadd.f32 %v1634_v18, %v5022_v46  ;;  %v1636_v0 = vpop.f32.mrb[19].mxu0  ;;  %2385 = vmatmul.mubr.bf16.gmra.mrb[124].mxu1 %v2114_v43  ;;  %v2081_v21 = vmax.f32 %v3469_v48, 0.0  ;;  %v3808_v43 = vld [vmem:[%s5162_s5 + $0x30] sm:$0xff]  }
 0x1f9   :  { %v3472_v52 = vadd.f32 %v1636_v0, %v5025_v50  ;;  %v2082_v57 = vmax.f32 %v3470_v54, 0.0 }
 0x1fa   :  { %v2084_v53 = vmax.f32 %v3471_v41, 0.0 }
 0x1fb   :  { %v2085_v8 = vmax.f32 %v3472_v52, 0.0 }
 0x1fc   :  { %v2117_v58 = vpack.c.bf16 %v2084_v53, %v2081_v21 }
 0x1fd   :  { %v2118_v55 = vpack.c.bf16 %v2085_v8, %v2082_v57  ;;  %v1640_v44 = vpop.f32.mrb[20].mxu0 }
 0x1fe   :  { %v3473_v60 = vadd.f32 %v1640_v44, %v5022_v46  ;;  %v1642_v32 = vpop.f32.mrb[21].mxu0 }
 0x1ff   :  { %v3474_v33 = vadd.f32 %v1642_v32, %v5025_v50  ;;  %v1644_v2 = vpop.f32.mrb[22].mxu0  ;;  %2392 = vmatprep.mubr.bf16.mxu1 %v2118_v55 }
 0x200   :  { %v3475_v61 = vadd.f32 %v1644_v2, %v5022_v46  ;;  %v1646_v3 = vpop.f32.mrb[23].mxu0  ;;  %2393 = vmatmul.mubr.bf16.gmra.mrb[128].mxu1 %v2117_v58  ;;  %v2087_v6 = vmax.f32 %v3473_v60, 0.0 }
 0x201   :  { %v3476_v22 = vadd.f32 %v1646_v3, %v5025_v50  ;;  %v2088_v9 = vmax.f32 %v3474_v33, 0.0  ;;  %v5104_v33 = vld [vmem:[%s5163_s4] ss:$0 sm:$0xff] }
 0x202   :  { %v2090_v25 = vmax.f32 %v3475_v61, 0.0 }
 0x203   :  { %v2091_v59 = vmax.f32 %v3476_v22, 0.0 }
 0x204   :  { %v2120_v42 = vpack.c.bf16 %v2090_v25, %v2087_v6 }
 0x205   :  { %v2121_v11 = vpack.c.bf16 %v2091_v59, %v2088_v9  ;;  %v1650_v45 = vpop.f32.mrb[24].mxu0 }
 0x206   :  { %v3477_v62 = vadd.f32 %v1650_v45, %v5022_v46  ;;  %v1652_v12 = vpop.f32.mrb[25].mxu0 }
 0x207   :  { %v3478_v49 = vadd.f32 %v1652_v12, %v5025_v50  ;;  %v1654_v63 = vpop.f32.mrb[26].mxu0  ;;  %2400 = vmatprep.mubr.bf16.mxu1 %v2121_v11 }
 0x208   :  { %v3479_v14 = vadd.f32 %v1654_v63, %v5022_v46  ;;  %v1656_v19 = vpop.f32.mrb[27].mxu0  ;;  %2401 = vmatmul.mubr.bf16.gmra.mrb[132].mxu1 %v2120_v42  ;;  %v2093_v4 = vmax.f32 %v3477_v62, 0.0 }
 0x209   :  { %v3480_v15 = vadd.f32 %v1656_v19, %v5025_v50  ;;  %v2094_v23 = vmax.f32 %v3478_v49, 0.0 }
 0x20a   :  { %v2096_v7 = vmax.f32 %v3479_v14, 0.0 }
 0x20b   :  { %v2097_v24 = vmax.f32 %v3480_v15, 0.0 }
 0x20c   :  { %v2123_v26 = vpack.c.bf16 %v2096_v7, %v2093_v4 }
 0x20d   :  { %v2124_v29 = vpack.c.bf16 %v2097_v24, %v2094_v23  ;;  %v1660_v17 = vpop.f32.mrb[28].mxu0 }
 0x20e   :  { %v3481_v1 = vadd.f32 %v1660_v17, %v5022_v46  ;;  %v1662_v27 = vpop.f32.mrb[29].mxu0 }
 0x20f   :  { %v3482_v20 = vadd.f32 %v1662_v27, %v5025_v50  ;;  %v1664_v28 = vpop.f32.mrb[30].mxu0  ;;  %2408 = vmatprep.mubr.bf16.mxu1 %v2124_v29 }
 0x210   :  { %v3483_v30 = vadd.f32 %v1664_v28, %v5022_v46  ;;  %v1666_v5 = vpop.f32.mrb[31].mxu0  ;;  %2409 = vmatmul.mubr.bf16.gmra.mrb[136].mxu1 %v2123_v26  ;;  %v2099_v10 = vmax.f32 %v3481_v1, 0.0  ;;  %v3803_v46 = vld [vmem:[%s5162_s5 + $0x8] sm:$0xff]  }
 0x211   :  { %v3484_v31 = vadd.f32 %v1666_v5, %v5025_v50  ;;  %v2100_v13 = vmax.f32 %v3482_v20, 0.0  ;;  %3423 = vmatprep.subr.bf16.mxu1 %v3803_v46  ;;  %v3804_v50 = vld [vmem:[%s5162_s5 + $0x10] sm:$0xff]  }
 0x212   :  { %v2102_v35 = vmax.f32 %v3483_v30, 0.0  ;;  %3424 = vmatpush3.bf16.msra.mxu1 %v3803_v46 }
 0x213   :  { %v2103_v38 = vmax.f32 %v3484_v31, 0.0  ;;  %3425 = vmatprep.subr.bf16.mxu1 %v3804_v50 }
 0x214   :  { %v2126_v37 = vpack.c.bf16 %v2102_v35, %v2099_v10 }
 0x215   :  { %v2127_v51 = vpack.c.bf16 %v2103_v38, %v2100_v13 }
 0x216   :  { %3426 = vmatpush3.bf16.msra.mxu1 %v3804_v50 }
 0x217   :  { %2416 = vmatprep.mubr.bf16.mxu1 %v2127_v51  ;;  %3427 = vmatprep.subr.bf16.mxu1 %v3805_v39 }
 0x218   :  { %2417 = vmatmul.mubr.bf16.gmra.mrb[140].mxu1 %v2126_v37 }
 0x21a   :  { %3428 = vmatpush3.bf16.msra.mxu1 %v3805_v39 }
 0x21b   :  { %3429 = vmatprep.subr.bf16.mxu1 %v3806_v40 }
 0x21e   :  { %3430 = vmatpush3.bf16.msra.mxu1 %v3806_v40 }
 0x21f   :  { %3431 = vmatprep.subr.bf16.mxu1 %v3807_v56 }
 0x222   :  { %3432 = vmatpush3.bf16.msra.mxu1 %v3807_v56 }
 0x223   :  { %3433 = vmatprep.subr.bf16.mxu1 %v3808_v43 }
 0x226   :  { %3434 = vmatpush3.bf16.msra.mxu1 %v3808_v43 }
 0x227   :  { %3435 = vmatprep.subr.bf16.mxu1 %v3809_v36 }
 0x22a   :  { %3436 = vmatpush3.bf16.msra.mxu1 %v3809_v36 }
 0x294   :  { %v3407_v47 = vpop.f32.mrb[32].mxu0 }
 0x295   :  { %v2459_v48 = vpop.f32.mrb[33].mxu0 }
 0x296   :  { %v3408_v16 = vpop.f32.mrb[34].mxu0 }
 0x297   :  { %v2462_v54 = vpop.f32.mrb[35].mxu0 }
 0x29c   :  { %v3411_v18 = vpop.f32.mrb[36].mxu0 }
 0x29d   :  { %v2475_v41 = vpop.f32.mrb[37].mxu0 }
 0x29e   :  { %v5083_v0 = vpop.f32.mrb[38].mxu0 }
 0x29f   :  { %v2478_v52 = vpop.f32.mrb[39].mxu0 }
 0x2a4   :  { %v5085_v21 = vpop.f32.mrb[40].mxu0 }
 0x2a5   :  { %v5087_v53 = vpop.f32.mrb[41].mxu0 }
 0x2a6   :  { %v5089_v57 = vpop.f32.mrb[42].mxu0 }
 0x2a7   :  { %v5091_v8 = vpop.f32.mrb[43].mxu0 }
 0x2ac   :  { %v5093_v58 = vpop.f32.mrb[44].mxu0 }
 0x2ad   :  { %v5095_v55 = vpop.f32.mrb[45].mxu0 }
 0x2ae   :  { %v5097_v44 = vpop.f32.mrb[46].mxu0 }
 0x2af   :  { %v5099_v60 = vpop.f32.mrb[47].mxu0 }
 0x2b3   :  { %v3291_v32 = vpop.f32.mrb[112].mxu1 }
 0x2b4   :  { %v3292_v2 = vpop.f32.mrb[113].mxu1 }
 0x2b5   :  { %v3293_v61 = vadd.f32 %v3292_v2, %v3291_v32  ;;  %v3294_v3 = vpop.f32.mrb[114].mxu1 }
 0x2b6   :  { %v3295_v22 = vpop.f32.mrb[115].mxu1 }
 0x2b7   :  { %v2363_v6 = vadd.f32 %v3293_v61, %v5104_v33  ;;  %v3296_v25 = vadd.f32 %v3295_v22, %v3294_v3 }
 0x2b9   :  { %v2460_v9 = vadd.f32 %v2459_v48, %v2363_v6  ;;  %v2366_v59 = vadd.f32 %v3296_v25, %v5104_v33 }
 0x2bb   :  { %v2463_v42 = vadd.f32 %v2462_v54, %v2366_v59  ;;  %v3297_v11 = vpop.f32.mrb[116].mxu1  ;;  %v2522_v62 = vmax.f32 %v2460_v9, 0.0 }
 0x2bc   :  { %v3298_v45 = vpop.f32.mrb[117].mxu1 }
 0x2bd   :  { %v2523_v12 = vmax.f32 %v2463_v42, 0.0  ;;  %v3299_v49 = vadd.f32 %v3298_v45, %v3297_v11  ;;  %v3300_v63 = vpop.f32.mrb[118].mxu1 }
 0x2be   :  { %v3301_v14 = vpop.f32.mrb[119].mxu1 }
 0x2bf   :  { %v2371_v19 = vadd.f32 %v3299_v49, %v5104_v33  ;;  %v3302_v15 = vadd.f32 %v3301_v14, %v3300_v63  ;;  %v2538_v4 = vpack.c.bf16 %v2523_v12, %v2522_v62 }
 0x2c1   :  { %v2468_v7 = vadd.f32 %v3407_v47, %v2371_v19  ;;  %v2374_v23 = vadd.f32 %v3302_v15, %v5104_v33  ;;  %3437 = vmatprep.mubr.bf16.mxu1 %v2538_v4 }
 0x2c3   :  { %v2471_v24 = vadd.f32 %v3408_v16, %v2374_v23  ;;  %v3303_v26 = vpop.f32.mrb[120].mxu1  ;;  %v2524_v17 = vmax.f32 %v2468_v7, 0.0 }
 0x2c4   :  { %v3304_v29 = vpop.f32.mrb[121].mxu1 }
 0x2c5   :  { %v2525_v1 = vmax.f32 %v2471_v24, 0.0  ;;  %v3305_v27 = vadd.f32 %v3304_v29, %v3303_v26  ;;  %v3306_v20 = vpop.f32.mrb[122].mxu1 }
 0x2c6   :  { %v3307_v28 = vpop.f32.mrb[123].mxu1 }
 0x2c7   :  { %v2539_v30 = vpack.c.bf16 %v2525_v1, %v2524_v17  ;;  %v2379_v5 = vadd.f32 %v3305_v27, %v5104_v33  ;;  %v3308_v31 = vadd.f32 %v3307_v28, %v3306_v20 }
 0x2c9   :  { %v2476_v10 = vadd.f32 %v2475_v41, %v2379_v5  ;;  %v2382_v35 = vadd.f32 %v3308_v31, %v5104_v33  ;;  %3438 = vmatmul.mubr.bf16.vlgmr.msra.gmra.mrb[144].mxu1 %v2539_v30 }
 0x2cb   :  { %v2479_v13 = vadd.f32 %v2478_v52, %v2382_v35  ;;  %v3309_v38 = vpop.f32.mrb[124].mxu1  ;;  %v2526_v51 = vmax.f32 %v2476_v10, 0.0 }
 0x2cc   :  { %v3310_v37 = vpop.f32.mrb[125].mxu1 }
 0x2cd   :  { %v2527_v34 = vmax.f32 %v2479_v13, 0.0  ;;  %v3311_v46 = vadd.f32 %v3310_v37, %v3309_v38  ;;  %v3312_v50 = vpop.f32.mrb[126].mxu1 }
 0x2ce   :  { %v3313_v39 = vpop.f32.mrb[127].mxu1 }
 0x2cf   :  { %v2387_v40 = vadd.f32 %v3311_v46, %v5104_v33  ;;  %v3314_v56 = vadd.f32 %v3313_v39, %v3312_v50  ;;  %v2540_v43 = vpack.c.bf16 %v2527_v34, %v2526_v51 }
 0x2d1   :  { %v2484_v36 = vadd.f32 %v3411_v18, %v2387_v40  ;;  %v2390_v47 = vadd.f32 %v3314_v56, %v5104_v33  ;;  %3441 = vmatprep.mubr.bf16.mxu1 %v2540_v43  ;;  %v2986_v56 = vld [vmem:[%s5164_s6] ss:$0 sm:$0xff] }
 0x2d3   :  { %v2487_v48 = vadd.f32 %v5083_v0, %v2390_v47  ;;  %v3315_v16 = vpop.f32.mrb[128].mxu1  ;;  %v2528_v41 = vmax.f32 %v2484_v36, 0.0 }
 0x2d4   :  { %v3316_v54 = vpop.f32.mrb[129].mxu1 }
 0x2d5   :  { %v2529_v52 = vmax.f32 %v2487_v48, 0.0  ;;  %v3317_v32 = vadd.f32 %v3316_v54, %v3315_v16  ;;  %v3318_v2 = vpop.f32.mrb[130].mxu1 }
 0x2d6   :  { %v3319_v61 = vpop.f32.mrb[131].mxu1 }
 0x2d7   :  { %v2395_v3 = vadd.f32 %v3317_v32, %v5104_v33  ;;  %v3320_v22 = vadd.f32 %v3319_v61, %v3318_v2  ;;  %v2541_v6 = vpack.c.bf16 %v2529_v52, %v2528_v41 }
 0x2d9   :  { %v2492_v25 = vadd.f32 %v5087_v53, %v2395_v3  ;;  %v2398_v18 = vadd.f32 %v3320_v22, %v5104_v33  ;;  %3442 = vmatmul.mubr.bf16.gmra.mrb[148].mxu1 %v2541_v6 }
 0x2db   :  { %v2495_v9 = vadd.f32 %v5091_v8, %v2398_v18  ;;  %v3321_v59 = vpop.f32.mrb[132].mxu1  ;;  %v2530_v42 = vmax.f32 %v2492_v25, 0.0 }
 0x2dc   :  { %v3322_v0 = vpop.f32.mrb[133].mxu1 }
 0x2dd   :  { %v2531_v11 = vmax.f32 %v2495_v9, 0.0  ;;  %v3323_v45 = vadd.f32 %v3322_v0, %v3321_v59  ;;  %v3324_v62 = vpop.f32.mrb[134].mxu1 }
 0x2de   :  { %v3325_v12 = vpop.f32.mrb[135].mxu1 }
 0x2df   :  { %v2403_v49 = vadd.f32 %v3323_v45, %v5104_v33  ;;  %v3326_v63 = vadd.f32 %v3325_v12, %v3324_v62  ;;  %v2542_v14 = vpack.c.bf16 %v2531_v11, %v2530_v42 }
 0x2e1   :  { %v2500_v19 = vadd.f32 %v5085_v21, %v2403_v49  ;;  %v2406_v53 = vadd.f32 %v3326_v63, %v5104_v33  ;;  %3445 = vmatprep.mubr.bf16.mxu1 %v2542_v14 }
 0x2e3   :  { %v2503_v15 = vadd.f32 %v5089_v57, %v2406_v53  ;;  %v3327_v4 = vpop.f32.mrb[136].mxu1  ;;  %v2532_v7 = vmax.f32 %v2500_v19, 0.0 }
 0x2e4   :  { %v3328_v8 = vpop.f32.mrb[137].mxu1 }
 0x2e5   :  { %v2533_v23 = vmax.f32 %v2503_v15, 0.0  ;;  %v3329_v24 = vadd.f32 %v3328_v8, %v3327_v4  ;;  %v3330_v26 = vpop.f32.mrb[138].mxu1 }
 0x2e6   :  { %v3331_v29 = vpop.f32.mrb[139].mxu1 }
 0x2e7   :  { %v2411_v17 = vadd.f32 %v3329_v24, %v5104_v33  ;;  %v3332_v1 = vadd.f32 %v3331_v29, %v3330_v26  ;;  %v2543_v27 = vpack.c.bf16 %v2533_v23, %v2532_v7 }
 0x2e9   :  { %v2508_v20 = vadd.f32 %v5095_v55, %v2411_v17  ;;  %v2414_v21 = vadd.f32 %v3332_v1, %v5104_v33  ;;  %3446 = vmatmul.mubr.bf16.gmra.mrb[152].mxu1 %v2543_v27 }
 0x2eb   :  { %v2511_v28 = vadd.f32 %v5099_v60, %v2414_v21  ;;  %v3333_v30 = vpop.f32.mrb[140].mxu1  ;;  %v2534_v5 = vmax.f32 %v2508_v20, 0.0 }
 0x2ec   :  { %v3334_v57 = vpop.f32.mrb[141].mxu1 }
 0x2ed   :  { %v2535_v31 = vmax.f32 %v2511_v28, 0.0  ;;  %v3335_v10 = vadd.f32 %v3334_v57, %v3333_v30  ;;  %v3336_v35 = vpop.f32.mrb[142].mxu1 }
 0x2ee   :  { %v3337_v13 = vpop.f32.mrb[143].mxu1 }
 0x2ef   :  { %v2419_v38 = vadd.f32 %v3335_v10, %v5104_v33  ;;  %v3338_v37 = vadd.f32 %v3337_v13, %v3336_v35  ;;  %v2544_v51 = vpack.c.bf16 %v2535_v31, %v2534_v5 }
 0x2f1   :  { %v2516_v34 = vadd.f32 %v5093_v58, %v2419_v38  ;;  %v2422_v55 = vadd.f32 %v3338_v37, %v5104_v33  ;;  %3449 = vmatprep.mubr.bf16.mxu1 %v2544_v51 }
 0x2f3   :  { %v2519_v46 = vadd.f32 %v5097_v44, %v2422_v55  ;;  %v2536_v50 = vmax.f32 %v2516_v34, 0.0 }
 0x2f5   :  { %v2537_v60 = vmax.f32 %v2519_v46, 0.0 }
 0x2f7   :  { %v2545_v39 = vpack.c.bf16 %v2537_v60, %v2536_v50 }
 0x2f9   :  { %3450 = vmatmul.mubr.bf16.gmra.mrb[156].mxu1 %v2545_v39 }
 0x39c   :  { %v3439_v40 = vpop.f32.mrb[144].mxu1 }
 0x39d   :  { %v2651_v43 = vpop.f32.mrb[145].mxu1  ;;  %v2660_v47 = vadd.f32 %v3439_v40, %v2986_v56 }
 0x39e   :  { %v3440_v36 = vpop.f32.mrb[146].mxu1  ;;  %v2652_v58 = vadd.f32 %v2986_v56, %v2651_v43 }
 0x39f   :  { %v2663_v48 = vadd.f32 %v3440_v36, %v2986_v56  ;;  %v2654_v16 = vpop.f32.mrb[147].mxu1 }
 0x3a0   :  { %v2655_v54 = vadd.f32 %v2986_v56, %v2654_v16 }
 0x3a1   :  { %v3035_v33 = vpack.c.bf16 %v2663_v48, %v2660_v47 }
 0x3a2   :  { %v3030_v41 = vpack.c.bf16 %v2655_v54, %v2652_v58 }
 0x3a3   :  { %3067 = vst [vmem:[%s5165_s7 + $0x8] sm:$0xff] %v3035_v33  }
 0x3a4   :  { %3031 = vst [vmem:[%s5165_s7] sm:$0xff] %v3030_v41  }
 0x3ac   :  { %v3443_v44 = vpop.f32.mrb[148].mxu1 }
 0x3ad   :  { %v2667_v52 = vpop.f32.mrb[149].mxu1  ;;  %v2676_v2 = vadd.f32 %v3443_v44, %v2986_v56 }
 0x3ae   :  { %v3444_v32 = vpop.f32.mrb[150].mxu1  ;;  %v2668_v22 = vadd.f32 %v2986_v56, %v2667_v52 }
 0x3af   :  { %v2679_v61 = vadd.f32 %v3444_v32, %v2986_v56  ;;  %v2670_v3 = vpop.f32.mrb[151].mxu1 }
 0x3b0   :  { %v2671_v6 = vadd.f32 %v2986_v56, %v2670_v3 }
 0x3b1   :  { %v3045_v25 = vpack.c.bf16 %v2679_v61, %v2676_v2 }
 0x3b2   :  { %v3040_v18 = vpack.c.bf16 %v2671_v6, %v2668_v22 }
 0x3b3   :  { %3069 = vst [vmem:[%s5165_s7 + $0x18] sm:$0xff] %v3045_v25  }
 0x3b4   :  { %3068 = vst [vmem:[%s5165_s7 + $0x10] sm:$0xff] %v3040_v18  }
 0x3bc   :  { %v3447_v9 = vpop.f32.mrb[152].mxu1 }
 0x3bd   :  { %v2683_v59 = vpop.f32.mrb[153].mxu1  ;;  %v2692_v42 = vadd.f32 %v3447_v9, %v2986_v56 }
 0x3be   :  { %v3448_v0 = vpop.f32.mrb[154].mxu1  ;;  %v2684_v62 = vadd.f32 %v2986_v56, %v2683_v59 }
 0x3bf   :  { %v2695_v11 = vadd.f32 %v3448_v0, %v2986_v56  ;;  %v2686_v45 = vpop.f32.mrb[155].mxu1 }
 0x3c0   :  { %v2687_v12 = vadd.f32 %v2986_v56, %v2686_v45 }
 0x3c1   :  { %v3055_v49 = vpack.c.bf16 %v2695_v11, %v2692_v42 }
 0x3c2   :  { %v3050_v63 = vpack.c.bf16 %v2687_v12, %v2684_v62 }
 0x3c3   :  { %3071 = vst [vmem:[%s5165_s7 + $0x28] sm:$0xff] %v3055_v49  }
 0x3c4   :  { %3070 = vst [vmem:[%s5165_s7 + $0x20] sm:$0xff] %v3050_v63  }
 0x3cc   :  { %v3451_v14 = vpop.f32.mrb[156].mxu1 }
 0x3cd   :  { %v2699_v19 = vpop.f32.mrb[157].mxu1  ;;  %v2708_v15 = vadd.f32 %v3451_v14, %v2986_v56 }
 0x3ce   :  { %v3452_v53 = vpop.f32.mrb[158].mxu1  ;;  %v2700_v7 = vadd.f32 %v2986_v56, %v2699_v19 }
 0x3cf   :  { %v2711_v4 = vadd.f32 %v3452_v53, %v2986_v56  ;;  %v2702_v8 = vpop.f32.mrb[159].mxu1 }
 0x3d0   :  { %v2703_v23 = vadd.f32 %v2986_v56, %v2702_v8 }
 0x3d1   :  { %v3065_v24 = vpack.c.bf16 %v2711_v4, %v2708_v15 }
 0x3d2   :  { %v3060_v26 = vpack.c.bf16 %v2703_v23, %v2700_v7 }
 0x3d3   :  { %3073 = vst [vmem:[%s5165_s7 + $0x38] sm:$0xff] %v3065_v24  }
 0x3d4   :  { %3072 = vst [vmem:[%s5165_s7 + $0x30] sm:$0xff] %v3060_v26  }

</bundles_post_ra>
